<compile_context>
chip_gen: v5e
topology: v5e:2x2
jax: 0.10.0
libtpu: 0.0.40
codegen_flags: <defaults>
</compile_context>

<pallas_src>
import functools
import math

import jax
import jax.numpy as jnp
from jax.experimental import pallas as pl
from jax.experimental.pallas import tpu as pltpu


# ----------------------------------------------------------------------------
# Single fused kernel: one-hot embedding matmul + K-packed multi-window conv +
# masked segmented max over time + tanh + Linear/ReLU/Linear/ReLU/Linear.
# ----------------------------------------------------------------------------
def fused_kernel(tok_ref, emb_ref, wc_ref, bc_ref, lim_ref,
                 w1_ref, b1_ref, w2_ref, b2_ref, w3_ref, b3_ref,
                 o_ref, *, num_batch, l_pad, max_ws):
    # tok_ref: (B*L_pad, 1) int32   — tokens, batch folded into sublanes
    # emb_ref: (vocab, d_w)         — embedding table (VMEM resident)
    # wc_ref : (max_ws*d_w, NF)     — tap-packed conv weights (NF = nf*nwin),
    #                                 rows j*d_w:(j+1)*d_w zero for j >= ws_k
    # bc_ref : (1, NF)              — packed conv bias
    # lim_ref: (1, NF) int32        — per packed column: last valid t = L - ws_k
    total = tok_ref.shape[0]                      # B * L_pad
    vocab = emb_ref.shape[0]
    NF = wc_ref.shape[-1]

    # ---- embedding gather: ONE exact one-hot matmul for the whole batch ----
    tok = tok_ref[...]                                            # (total, 1)
    lane_iota = jax.lax.broadcasted_iota(jnp.int32, (total, vocab), 1)
    onehot = (tok == lane_iota).astype(jnp.float32)               # (total, vocab)
    x = jnp.dot(onehot, emb_ref[...],
                preferred_element_type=jnp.float32)               # (total, d_w)

    # ---- K-pack the conv taps via sublane rolls (XLU; MXU-idle slot) -------
    # tap j needs x[t + j]; roll by (total - j) == roll by -j.
    taps = [x]
    for j in range(1, max_ws):                    # static, tiny trip count
        taps.append(pltpu.roll(x, shift=total - j, axis=0))
    x_packed = jnp.concatenate(taps, axis=1)      # (total, max_ws*d_w)

    # ---- ONE packed conv matmul for all windows / taps / batch rows --------
    acc = jnp.dot(x_packed, wc_ref[...],
                  preferred_element_type=jnp.float32)             # (total, NF)

    # ---- masked segmented global max over time -----------------------------
    t_idx = jax.lax.broadcasted_iota(jnp.int32, (l_pad, NF), 0)
    valid = t_idx <= lim_ref[...]                                 # (L_pad, NF)
    acc3 = acc.reshape(num_batch, l_pad, NF)                      # relayout-free
    masked = jnp.where(valid[None], acc3, -jnp.inf)
    # Conv bias added AFTER the max (constant along the reduced axis).
    feat = jnp.max(masked, axis=1) + bc_ref[...]                  # (B, NF)

    # ---- head: tanh -> Linear -> ReLU -> Linear -> ReLU -> Linear ----------
    h = jnp.tanh(feat)
    h = jnp.maximum(
        jnp.dot(h, w1_ref[...], preferred_element_type=jnp.float32) + b1_ref[...],
        0.0)
    h = jnp.maximum(
        jnp.dot(h, w2_ref[...], preferred_element_type=jnp.float32) + b2_ref[...],
        0.0)
    o_ref[...] = (jnp.dot(h, w3_ref[...], preferred_element_type=jnp.float32)
                  + b3_ref[...])


def fused_forward(tok, emb, wc, bc, lim, w1, b1, w2, b2, w3, b3,
                  *, num_batch, l_pad, max_ws):
    nc = w3.shape[-1]

    def full(a):
        return pl.BlockSpec(a.shape, lambda i, _nd=a.ndim: (0,) * _nd)

    return pl.pallas_call(
        functools.partial(fused_kernel, num_batch=num_batch, l_pad=l_pad,
                          max_ws=max_ws),
        out_shape=jax.ShapeDtypeStruct((num_batch, nc), jnp.float32),
        grid=(1,),
        in_specs=[full(tok), full(emb), full(wc), full(bc), full(lim),
                  full(w1), full(b1), full(w2), full(b2), full(w3), full(b3)],
        out_specs=pl.BlockSpec((num_batch, nc), lambda i: (0, 0)),
        compiler_params=pltpu.CompilerParams(
            dimension_semantics=("arbitrary",)),
    )(tok, emb, wc, bc, lim, w1, b1, w2, b2, w3, b3)


# ----------------------------------------------------------------------------
# Parameter init (deterministic, mirrors nn.init.xavier_uniform_ / zeros_)
# ----------------------------------------------------------------------------
def xavier_uniform(key, shape, fan_in, fan_out):
    bound = math.sqrt(6.0 / (fan_in + fan_out))
    return jax.random.uniform(key, shape, jnp.float32, -bound, bound)


def init_params(key, vocab, d_w, num_filter, window_sizes, num_classes,
                seq_len):
    keys = jax.random.split(key, 2 + len(window_sizes) + 3)
    params = {}
    # nn.Embedding.from_pretrained(word_emb_weight): synthetic N(0,1) table.
    params["emb"] = jax.random.normal(keys[0], (vocab, d_w), jnp.float32)
    # Conv2d weights (out=nf, in=1, kh=ws, kw=d_w) stored as (ws, d_w, nf).
    params["conv"] = []
    for i, ws in enumerate(window_sizes):
        fan_in, fan_out = 1 * ws * d_w, num_filter * ws * d_w
        w = xavier_uniform(keys[1 + i], (ws, d_w, num_filter), fan_in, fan_out)
        b = jnp.zeros((1, num_filter), jnp.float32)
        params["conv"].append((w, b))
    nwin = len(window_sizes)
    k1, k2, k3 = keys[1 + nwin:4 + nwin]
    # Linear weights stored transposed (in, out) for h @ W.
    params["w1"] = xavier_uniform(k1, (num_filter * nwin, num_filter),
                                  num_filter * nwin, num_filter)
    params["b1"] = jnp.zeros((1, num_filter), jnp.float32)
    params["w2"] = xavier_uniform(k2, (num_filter, num_filter // 2),
                                  num_filter, num_filter // 2)
    params["b2"] = jnp.zeros((1, num_filter // 2), jnp.float32)
    params["w3"] = xavier_uniform(k3, (num_filter // 2, num_classes),
                                  num_filter // 2, num_classes)
    params["b3"] = jnp.zeros((1, num_classes), jnp.float32)

    # Tap-packed conv params for the fused kernel: wc_flat[j*d_w + d, col].
    max_ws = max(window_sizes)
    NF = num_filter * nwin
    wc = jnp.zeros((max_ws, d_w, NF), jnp.float32)
    for k, (ws, (w, _)) in enumerate(zip(window_sizes, params["conv"])):
        wc = wc.at[:ws, :, k * num_filter:(k + 1) * num_filter].set(w)
    params["conv_w_flat"] = wc.reshape(max_ws * d_w, NF)
    params["conv_b_packed"] = jnp.concatenate(
        [b for (_, b) in params["conv"]], axis=1)
    params["time_limit"] = jnp.concatenate(
        [jnp.full((1, num_filter), seq_len - ws, jnp.int32)
         for ws in window_sizes], axis=1)
    return params


# ----------------------------------------------------------------------------
# Forward: tiny int32 pad/reshape glue + ONE fused Pallas call.
# ----------------------------------------------------------------------------
def forward(params, tokens, window_sizes, *, l_pad=160):
    B, L = tokens.shape
    max_ws = max(window_sizes)
    assert l_pad % 8 == 0 and l_pad >= L
    tok = jnp.pad(tokens.astype(jnp.int32), ((0, 0), (0, l_pad - L)))
    tok = tok.reshape(B * l_pad, 1)               # batch folded into sublanes
    return fused_forward(
        tok, params["emb"], params["conv_w_flat"], params["conv_b_packed"],
        params["time_limit"], params["w1"], params["b1"], params["w2"],
        params["b2"], params["w3"], params["b3"],
        num_batch=B, l_pad=l_pad, max_ws=max_ws)


def forward_ref(params, tokens, window_sizes):
    # Pure-JAX reference mirroring the PyTorch module exactly.
    x_emb = params["emb"][tokens]
    feats = []
    for ws, (w, b) in zip(window_sizes, params["conv"]):
        L = x_emb.shape[1]
        T = L - ws + 1
        acc = sum(jnp.einsum("btd,df->btf", x_emb[:, j:j + T, :], w[j])
                  for j in range(ws)) + b[None]
        feats.append(jnp.max(acc, axis=1))
    h = jnp.tanh(jnp.concatenate(feats, axis=1))
    h = jnp.maximum(h @ params["w1"] + params["b1"], 0.0)
    h = jnp.maximum(h @ params["w2"] + params["b2"], 0.0)
    return h @ params["w3"] + params["b3"]


if __name__ == "__main__":
    d_w = 32
    num_filter = 8
    window_sizes = (2, 3, 4)
    num_classes = 2
    vocab = 50
    B, L = 2, 150          # L = 150 is fixed by the MaxPool2d(150 - ws + 1) kernel

    key = jax.random.PRNGKey(0)
    k_params, k_tokens = jax.random.split(key)
    params = init_params(k_params, vocab, d_w, num_filter, window_sizes,
                         num_classes, seq_len=L)
    tokens = jax.random.randint(k_tokens, (B, L), 0, vocab, dtype=jnp.int32)

    out = forward(params, tokens, window_sizes)
    out = jax.block_until_ready(out)

    ref = forward_ref(params, tokens, window_sizes)
    assert out.shape == (B, num_classes)
    assert jnp.allclose(out, ref, rtol=1e-4, atol=1e-4)

    print("KERNEL_OK")
</pallas_src>

<mosaic_0001>
module attributes {stable_mosaic.version = 11 : i64} {
  func.func @fused_kernel(%arg0: i32, %arg1: memref<320x1xi32, #tpu.memory_space<vmem>>, %arg2: memref<50x32xf32, #tpu.memory_space<vmem>>, %arg3: memref<128x24xf32, #tpu.memory_space<vmem>>, %arg4: memref<1x24xf32, #tpu.memory_space<vmem>>, %arg5: memref<1x24xi32, #tpu.memory_space<vmem>>, %arg6: memref<24x8xf32, #tpu.memory_space<vmem>>, %arg7: memref<1x8xf32, #tpu.memory_space<vmem>>, %arg8: memref<8x4xf32, #tpu.memory_space<vmem>>, %arg9: memref<1x4xf32, #tpu.memory_space<vmem>>, %arg10: memref<4x2xf32, #tpu.memory_space<vmem>>, %arg11: memref<1x2xf32, #tpu.memory_space<vmem>>, %arg12: memref<2x2xf32, #tpu.memory_space<vmem>>) attributes {dimension_semantics = [#tpu.dimension_semantics<arbitrary>], iteration_bounds = array<i64: 1>, scalar_prefetch = 0 : i64, scratch_operands = 0 : i64, tpu.core_type = #tpu.core_type<tc>, window_params = [{pipeline_mode = #tpu.pipeline_mode<synchronous>, transform_indices = @transform_0, window_bounds = array<i64: 320, 1>}, {pipeline_mode = #tpu.pipeline_mode<synchronous>, transform_indices = @transform_1, window_bounds = array<i64: 50, 32>}, {pipeline_mode = #tpu.pipeline_mode<synchronous>, transform_indices = @transform_2, window_bounds = array<i64: 128, 24>}, {pipeline_mode = #tpu.pipeline_mode<synchronous>, transform_indices = @transform_3, window_bounds = array<i64: 1, 24>}, {pipeline_mode = #tpu.pipeline_mode<synchronous>, transform_indices = @transform_4, window_bounds = array<i64: 1, 24>}, {pipeline_mode = #tpu.pipeline_mode<synchronous>, transform_indices = @transform_5, window_bounds = array<i64: 24, 8>}, {pipeline_mode = #tpu.pipeline_mode<synchronous>, transform_indices = @transform_6, window_bounds = array<i64: 1, 8>}, {pipeline_mode = #tpu.pipeline_mode<synchronous>, transform_indices = @transform_7, window_bounds = array<i64: 8, 4>}, {pipeline_mode = #tpu.pipeline_mode<synchronous>, transform_indices = @transform_8, window_bounds = array<i64: 1, 4>}, {pipeline_mode = #tpu.pipeline_mode<synchronous>, transform_indices = @transform_9, window_bounds = array<i64: 4, 2>}, {pipeline_mode = #tpu.pipeline_mode<synchronous>, transform_indices = @transform_10, window_bounds = array<i64: 1, 2>}, {pipeline_mode = #tpu.pipeline_mode<synchronous>, transform_indices = @transform_11, window_bounds = array<i64: 2, 2>}]} {
    %c0 = arith.constant 0 : index
    %c0_0 = arith.constant 0 : index
    %0 = vector.load %arg1[%c0, %c0_0] : memref<320x1xi32, #tpu.memory_space<vmem>>, vector<320x1xi32>
    %1 = tpu.iota {dimensions = array<i32: 1>} : vector<320x50xi32>
    %2 = vector.broadcast %0 : vector<320x1xi32> to vector<320x50xi32>
    %3 = arith.cmpi eq, %2, %1 : vector<320x50xi32>
    %4 = arith.extui %3 : vector<320x50xi1> to vector<320x50xi32>
    %5 = arith.sitofp %4 : vector<320x50xi32> to vector<320x50xf32>
    %c0_1 = arith.constant 0 : index
    %c0_2 = arith.constant 0 : index
    %6 = vector.load %arg2[%c0_1, %c0_2] : memref<50x32xf32, #tpu.memory_space<vmem>>, vector<50x32xf32>
    %cst = arith.constant dense<0.000000e+00> : vector<320x32xf32>
    %7 = tpu.matmul %5, %6, %cst {dimension_numbers = #tpu.dot_dimension_numbers<[1], [0], [0], [1], [0, 0, 1, 1], [], []>} : vector<320x50xf32>, vector<50x32xf32>, vector<320x32xf32> -> vector<320x32xf32>
    %c319_i32 = arith.constant 319 : i32
    %8 = tpu.dynamic_rotate %7 by %c319_i32 dim 0 : vector<320x32xf32>, i32 -> vector<320x32xf32>
    %c318_i32 = arith.constant 318 : i32
    %9 = tpu.dynamic_rotate %7 by %c318_i32 dim 0 : vector<320x32xf32>, i32 -> vector<320x32xf32>
    %c317_i32 = arith.constant 317 : i32
    %10 = tpu.dynamic_rotate %7 by %c317_i32 dim 0 : vector<320x32xf32>, i32 -> vector<320x32xf32>
    %11 = tpu.concatenate %7, %8, %9, %10 in 1 : vector<320x32xf32>, vector<320x32xf32>, vector<320x32xf32>, vector<320x32xf32> -> vector<320x128xf32>
    %c0_3 = arith.constant 0 : index
    %c0_4 = arith.constant 0 : index
    %12 = vector.load %arg3[%c0_3, %c0_4] : memref<128x24xf32, #tpu.memory_space<vmem>>, vector<128x24xf32>
    %cst_5 = arith.constant dense<0.000000e+00> : vector<320x24xf32>
    %13 = tpu.matmul %11, %12, %cst_5 {dimension_numbers = #tpu.dot_dimension_numbers<[1], [0], [0], [1], [0, 0, 1, 1], [], []>} : vector<320x128xf32>, vector<128x24xf32>, vector<320x24xf32> -> vector<320x24xf32>
    %14 = tpu.iota {dimensions = array<i32: 0>} : vector<160x24xi32>
    %c0_6 = arith.constant 0 : index
    %c0_7 = arith.constant 0 : index
    %15 = vector.load %arg5[%c0_6, %c0_7] : memref<1x24xi32, #tpu.memory_space<vmem>>, vector<1x24xi32>
    %16 = vector.broadcast %15 : vector<1x24xi32> to vector<160x24xi32>
    %17 = arith.cmpi sle, %14, %16 : vector<160x24xi32>
    %18 = vector.shape_cast %13 : vector<320x24xf32> to vector<2x160x24xf32>
    %19 = vector.shape_cast %17 : vector<160x24xi1> to vector<1x160x24xi1>
    %cst_8 = arith.constant 0xFF800000 : f32
    %20 = vector.shape_cast %19 : vector<1x160x24xi1> to vector<1x160x24xi1>
    %21 = vector.broadcast %20 : vector<1x160x24xi1> to vector<2x160x24xi1>
    %22 = vector.broadcast %cst_8 : f32 to vector<2x160x24xf32>
    %23 = arith.select %21, %18, %22 : vector<2x160x24xi1>, vector<2x160x24xf32>
    %cst_9 = arith.constant dense<0xFF800000> : vector<2x24xf32>
    %24 = vector.multi_reduction <maximumf>, %23, %cst_9 [1] : vector<2x160x24xf32> to vector<2x24xf32>
    %c0_10 = arith.constant 0 : index
    %c0_11 = arith.constant 0 : index
    %25 = vector.load %arg4[%c0_10, %c0_11] : memref<1x24xf32, #tpu.memory_space<vmem>>, vector<1x24xf32>
    %26 = vector.broadcast %25 : vector<1x24xf32> to vector<2x24xf32>
    %27 = arith.addf %24, %26 : vector<2x24xf32>
    %28 = math.tanh %27 : vector<2x24xf32>
    %c0_12 = arith.constant 0 : index
    %c0_13 = arith.constant 0 : index
    %29 = vector.load %arg6[%c0_12, %c0_13] : memref<24x8xf32, #tpu.memory_space<vmem>>, vector<24x8xf32>
    %cst_14 = arith.constant dense<0.000000e+00> : vector<2x8xf32>
    %30 = tpu.matmul %28, %29, %cst_14 {dimension_numbers = #tpu.dot_dimension_numbers<[1], [0], [0], [1], [0, 0, 1, 1], [], []>} : vector<2x24xf32>, vector<24x8xf32>, vector<2x8xf32> -> vector<2x8xf32>
    %c0_15 = arith.constant 0 : index
    %c0_16 = arith.constant 0 : index
    %31 = vector.load %arg7[%c0_15, %c0_16] : memref<1x8xf32, #tpu.memory_space<vmem>>, vector<1x8xf32>
    %32 = vector.broadcast %31 : vector<1x8xf32> to vector<2x8xf32>
    %33 = arith.addf %30, %32 : vector<2x8xf32>
    %cst_17 = arith.constant 0.000000e+00 : f32
    %34 = vector.broadcast %cst_17 : f32 to vector<2x8xf32>
    %35 = arith.maximumf %33, %34 : vector<2x8xf32>
    %c0_18 = arith.constant 0 : index
    %c0_19 = arith.constant 0 : index
    %36 = vector.load %arg8[%c0_18, %c0_19] : memref<8x4xf32, #tpu.memory_space<vmem>>, vector<8x4xf32>
    %cst_20 = arith.constant dense<0.000000e+00> : vector<2x4xf32>
    %37 = tpu.matmul %35, %36, %cst_20 {dimension_numbers = #tpu.dot_dimension_numbers<[1], [0], [0], [1], [0, 0, 1, 1], [], []>} : vector<2x8xf32>, vector<8x4xf32>, vector<2x4xf32> -> vector<2x4xf32>
    %c0_21 = arith.constant 0 : index
    %c0_22 = arith.constant 0 : index
    %38 = vector.load %arg9[%c0_21, %c0_22] : memref<1x4xf32, #tpu.memory_space<vmem>>, vector<1x4xf32>
    %39 = vector.broadcast %38 : vector<1x4xf32> to vector<2x4xf32>
    %40 = arith.addf %37, %39 : vector<2x4xf32>
    %cst_23 = arith.constant 0.000000e+00 : f32
    %41 = vector.broadcast %cst_23 : f32 to vector<2x4xf32>
    %42 = arith.maximumf %40, %41 : vector<2x4xf32>
    %c0_24 = arith.constant 0 : index
    %c0_25 = arith.constant 0 : index
    %43 = vector.load %arg10[%c0_24, %c0_25] : memref<4x2xf32, #tpu.memory_space<vmem>>, vector<4x2xf32>
    %cst_26 = arith.constant dense<0.000000e+00> : vector<2x2xf32>
    %44 = tpu.matmul %42, %43, %cst_26 {dimension_numbers = #tpu.dot_dimension_numbers<[1], [0], [0], [1], [0, 0, 1, 1], [], []>} : vector<2x4xf32>, vector<4x2xf32>, vector<2x2xf32> -> vector<2x2xf32>
    %c0_27 = arith.constant 0 : index
    %c0_28 = arith.constant 0 : index
    %45 = vector.load %arg11[%c0_27, %c0_28] : memref<1x2xf32, #tpu.memory_space<vmem>>, vector<1x2xf32>
    %46 = vector.broadcast %45 : vector<1x2xf32> to vector<2x2xf32>
    %47 = arith.addf %44, %46 : vector<2x2xf32>
    %c0_29 = arith.constant 0 : index
    %c0_30 = arith.constant 0 : index
    %48 = vector.load %arg12[%c0_29, %c0_30] : memref<2x2xf32, #tpu.memory_space<vmem>>, vector<2x2xf32>
    tpu.vector_store %arg12[%c0_29, %c0_30], %47 {strides = array<i32>} : memref<2x2xf32, #tpu.memory_space<vmem>>, vector<2x2xf32>,
    return
  }
  func.func @transform_0(%arg0: i32) -> (i32, i32) {
    %c0_i32 = arith.constant 0 : i32
    %c0_i32_0 = arith.constant 0 : i32
    %c0_i32_1 = arith.constant 0 : i32
    return %c0_i32, %c0_i32_0 : i32, i32
  }
  func.func @transform_1(%arg0: i32) -> (i32, i32) {
    %c0_i32 = arith.constant 0 : i32
    %c0_i32_0 = arith.constant 0 : i32
    %c0_i32_1 = arith.constant 0 : i32
    return %c0_i32, %c0_i32_0 : i32, i32
  }
  func.func @transform_2(%arg0: i32) -> (i32, i32) {
    %c0_i32 = arith.constant 0 : i32
    %c0_i32_0 = arith.constant 0 : i32
    %c0_i32_1 = arith.constant 0 : i32
    return %c0_i32, %c0_i32_0 : i32, i32
  }
  func.func @transform_3(%arg0: i32) -> (i32, i32) {
    %c0_i32 = arith.constant 0 : i32
    %c0_i32_0 = arith.constant 0 : i32
    %c0_i32_1 = arith.constant 0 : i32
    return %c0_i32, %c0_i32_0 : i32, i32
  }
  func.func @transform_4(%arg0: i32) -> (i32, i32) {
    %c0_i32 = arith.constant 0 : i32
    %c0_i32_0 = arith.constant 0 : i32
    %c0_i32_1 = arith.constant 0 : i32
    return %c0_i32, %c0_i32_0 : i32, i32
  }
  func.func @transform_5(%arg0: i32) -> (i32, i32) {
    %c0_i32 = arith.constant 0 : i32
    %c0_i32_0 = arith.constant 0 : i32
    %c0_i32_1 = arith.constant 0 : i32
    return %c0_i32, %c0_i32_0 : i32, i32
  }
  func.func @transform_6(%arg0: i32) -> (i32, i32) {
    %c0_i32 = arith.constant 0 : i32
    %c0_i32_0 = arith.constant 0 : i32
    %c0_i32_1 = arith.constant 0 : i32
    return %c0_i32, %c0_i32_0 : i32, i32
  }
  func.func @transform_7(%arg0: i32) -> (i32, i32) {
    %c0_i32 = arith.constant 0 : i32
    %c0_i32_0 = arith.constant 0 : i32
    %c0_i32_1 = arith.constant 0 : i32
    return %c0_i32, %c0_i32_0 : i32, i32
  }
  func.func @transform_8(%arg0: i32) -> (i32, i32) {
    %c0_i32 = arith.constant 0 : i32
    %c0_i32_0 = arith.constant 0 : i32
    %c0_i32_1 = arith.constant 0 : i32
    return %c0_i32, %c0_i32_0 : i32, i32
  }
  func.func @transform_9(%arg0: i32) -> (i32, i32) {
    %c0_i32 = arith.constant 0 : i32
    %c0_i32_0 = arith.constant 0 : i32
    %c0_i32_1 = arith.constant 0 : i32
    return %c0_i32, %c0_i32_0 : i32, i32
  }
  func.func @transform_10(%arg0: i32) -> (i32, i32) {
    %c0_i32 = arith.constant 0 : i32
    %c0_i32_0 = arith.constant 0 : i32
    %c0_i32_1 = arith.constant 0 : i32
    return %c0_i32, %c0_i32_0 : i32, i32
  }
  func.func @transform_11(%arg0: i32) -> (i32, i32) {
    %c0_i32 = arith.constant 0 : i32
    %c0_i32_0 = arith.constant 0 : i32
    %c0_i32_1 = arith.constant 0 : i32
    return %c0_i32, %c0_i32_0 : i32, i32
  }
}

</mosaic_0001>

<bundles_post_ra>
// kernel: tpu_custom_call.1
= control target key start
LH: loop header
LB: loop body
LE: loop exit
PB: predicated region body
PF: predicated region fallthrough
CT: control target
= control target key end

     0   :  { %v2380_v3 = vmov 0   ;;  %s3781_s0 = inlined_call_operand.vmem [shape: s32[320,1], index: 0, kind: input, shape index: {}]   ;;  %s3782_s1 = inlined_call_operand.vmem [shape: f32[50,32], index: 1, kind: input, shape index: {}]   ;;  %s3783_s2 = inlined_call_operand.vmem [shape: f32[128,24], index: 2, kind: input, shape index: {}]   ;;  %s3784_s3 = inlined_call_operand.vmem [shape: f32[1,24], index: 3, kind: input, shape index: {}]   ;;  %s3785_s4 = inlined_call_operand.vmem [shape: s32[1,24], index: 4, kind: input, shape index: {}]   ;;  %s3786_s5 = inlined_call_operand.vmem [shape: f32[24,8], index: 5, kind: input, shape index: {}]   ;;  %s3787_s6 = inlined_call_operand.vmem [shape: f32[1,8], index: 6, kind: input, shape index: {}]   ;;  %s3788_s7 = inlined_call_operand.vmem [shape: f32[8,4], index: 7, kind: input, shape index: {}]   ;;  %s3789_s8 = inlined_call_operand.vmem [shape: f32[1,4], index: 8, kind: input, shape index: {}]   ;;  %s3790_s9 = inlined_call_operand.vmem [shape: f32[4,2], index: 9, kind: input, shape index: {}]   ;;  %s3791_s10 = inlined_call_operand.vmem [shape: f32[1,2], index: 10, kind: input, shape index: {}]   ;;  %s3792_s11 = inlined_call_operand.hbm [shape: f32[2,2], index: 11, kind: output, shape index: {}]  }
   0x1   :  { %v43_v0 = vld [vmem:[%s3781_s0 + $0x20] sm:$0xff]  ;;  %v41_v1 = vld [vmem:[%s3781_s0 + $0x10] sm:$0xff]  ;;  %2059 = vset.pattern.permute.xlu2 %v2380_v3  ;;  %2058 = vset.pattern.permute.xlu1 %v2380_v3  ;;  %v44_v4 = vld [vmem:[%s3781_s0 + $0x28] sm:$0xff] }
   0x2   :  { %v39_v2 = vld [vmem:[%s3781_s0] sm:$0xff]  ;;  %2057 = vset.pattern.permute.xlu0 %v2380_v3  ;;  %94 = vperm.xlu2 %2059, %v43_v0  }
   0x3   :  { %88 = vperm.xlu1 %2058, %v41_v1   ;;  %82 = vperm.xlu0 %2057, %v39_v2  }
   0x4   :  { %16 = vsyncpa [#allocation3], 0  ;;  %v42_v5 = vld [vmem:[%s3781_s0 + $0x18] sm:$0xff]  ;;  %v40_v6 = vld [vmem:[%s3781_s0 + $0x8] sm:$0xff]  ;;  %vm449_vm0 = vcmask 1041408   ;;  %v79_v49 = vlaneseq  ;;  %vm328_vm1 = vcmask 408576  }
   0x5   :  { %v47_v7 = vld [vmem:[%s3781_s0 + $0x40] sm:$0xff]  ;;  %v46_v8 = vld [vmem:[%s3781_s0 + $0x38] sm:$0xff]  ;;  %v45_v9 = vld [vmem:[%s3781_s0 + $0x30] sm:$0xff]  ;;  %v2381_v54 = vmov 0.0   ;;  %s2383_s15 = smov 64   ;;  %s2384_s16 = smov 32  }
   0x6   :  { %v50_v10 = vld [vmem:[%s3781_s0 + $0x58] sm:$0xff]  ;;  %v49_v11 = vld [vmem:[%s3781_s0 + $0x50] sm:$0xff]  ;;  %v48_v12 = vld [vmem:[%s3781_s0 + $0x48] sm:$0xff]  ;;  %v2588_v50 = vand.u32 127, %v79_v49  ;;  %s2385_s24 = smov [#allocation2]   ;;  %s1918_s27 = sshll.u32 %s3792_s11, 4  ;;  %s1919_s27 = int_to_ptr.hbm [resolvable:$true] %s1918_s27 }
   0x7   :  { %v53_v13 = vld [vmem:[%s3781_s0 + $0x70] sm:$0xff]  ;;  %v52_v14 = vld [vmem:[%s3781_s0 + $0x68] sm:$0xff]  ;;  %v51_v15 = vld [vmem:[%s3781_s0 + $0x60] sm:$0xff] }
   0x8   :  { %v56_v16 = vld [vmem:[%s3781_s0 + $0x88] sm:$0xff]  ;;  %v55_v17 = vld [vmem:[%s3781_s0 + $0x80] sm:$0xff]  ;;  %v54_v18 = vld [vmem:[%s3781_s0 + $0x78] sm:$0xff] }
   0x9   :  { %v59_v19 = vld [vmem:[%s3781_s0 + $0xa0] sm:$0xff]  ;;  %v58_v20 = vld [vmem:[%s3781_s0 + $0x98] sm:$0xff]  ;;  %v57_v21 = vld [vmem:[%s3781_s0 + $0x90] sm:$0xff] }
   0xa   :  { %97 = vperm.xlu2 %2059, %v44_v4   ;;  %v62_v22 = vld [vmem:[%s3781_s0 + $0xb8] sm:$0xff]  ;;  %v61_v23 = vld [vmem:[%s3781_s0 + $0xb0] sm:$0xff]  ;;  %v60_v24 = vld [vmem:[%s3781_s0 + $0xa8] sm:$0xff] }
   0xb   :  { %91 = vperm.xlu1 %2058, %v42_v5   ;;  %85 = vperm.xlu0 %2057, %v40_v6   ;;  %v65_v25 = vld [vmem:[%s3781_s0 + $0xd0] sm:$0xff]  ;;  %v64_v26 = vld [vmem:[%s3781_s0 + $0xc8] sm:$0xff]  ;;  %v63_v27 = vld [vmem:[%s3781_s0 + $0xc0] sm:$0xff] }
   0xc   :  { %v327_v28 = vld [vmem:[%s3782_s1 + $0x30] sm:$0x3]  ;;  %v68_v29 = vld [vmem:[%s3781_s0 + $0xe8] sm:$0xff]  ;;  %v67_v30 = vld [vmem:[%s3781_s0 + $0xe0] sm:$0xff] }
   0xd   :  { %1967 = vmatpush.msk.msra.mxu0 %vm449_vm0, %v327_v28  ;;  %2012 = vmatpush.msk.msra.mxu3 %vm449_vm0, %v327_v28  ;;  %v66_v31 = vld [vmem:[%s3781_s0 + $0xd8] sm:$0xff]  ;;  %v326_v32 = vld [vmem:[%s3782_s1 + $0x28] sm:$0xff]  ;;  %v325_v33 = vld [vmem:[%s3782_s1 + $0x20] sm:$0xff] }
   0xe   :  { %v324_v34 = vld [vmem:[%s3782_s1 + $0x18] sm:$0xff]  ;;  %v71_v35 = vld [vmem:[%s3781_s0 + $0x100] sm:$0xff]  ;;  %v69_v37 = vld [vmem:[%s3781_s0 + $0xf0] sm:$0xff] }
   0xf   :  { %463 = vmatpush.msra.mxu0 %v326_v32  ;;  %2013 = vmatpush.msra.mxu3 %v326_v32  ;;  %v70_v36 = vld [vmem:[%s3781_s0 + $0xf8] sm:$0xff]  ;;  %v323_v38 = vld [vmem:[%s3782_s1 + $0x10] sm:$0xff]  ;;  %v322_v39 = vld [vmem:[%s3782_s1 + $0x8] sm:$0xff] }
  0x10   :  { %v321_v40 = vld [vmem:[%s3782_s1] sm:$0xff]  ;;  %v74_v41 = vld [vmem:[%s3781_s0 + $0x118] sm:$0xff]  ;;  %v73_v42 = vld [vmem:[%s3781_s0 + $0x110] sm:$0xff] }
  0x11   :  { %464 = vmatpush.msra.mxu0 %v325_v33  ;;  %2014 = vmatpush.msra.mxu3 %v325_v33  ;;  %v72_v43 = vld [vmem:[%s3781_s0 + $0x108] sm:$0xff]  ;;  %v77_v44 = vld [vmem:[%s3781_s0 + $0x130] sm:$0xff]  ;;  %v75_v46 = vld [vmem:[%s3781_s0 + $0x120] sm:$0xff] }
  0x12   :  { %106 = vperm.xlu2 %2059, %v47_v7   ;;  %v76_v45 = vld [vmem:[%s3781_s0 + $0x128] sm:$0xff]  ;;  %v78_v47 = vld [vmem:[%s3781_s0 + $0x138] sm:$0xff]  ;;  %s2382_s0 = smov 96  }
  0x13   :  { %103 = vperm.xlu1 %2058, %v46_v8   ;;  %100 = vperm.xlu0 %2057, %v45_v9  }
  0x14   :  { %465 = vmatpush.msra.mxu0 %v324_v34  ;;  %2015 = vmatpush.msra.mxu3 %v324_v34 }
  0x16   :  { %466 = vmatpush.msra.mxu0 %v323_v38  ;;  %2016 = vmatpush.msra.mxu3 %v323_v38 }
  0x18   :  { %467 = vmatpush.msra.mxu0 %v322_v39  ;;  %2017 = vmatpush.msra.mxu3 %v322_v39 }
  0x1a   :  { %115 = vperm.xlu2 %2059, %v50_v10   ;;  %468 = vmatpush.msra.mxu0 %v321_v40 }
  0x1b   :  { %112 = vperm.xlu1 %2058, %v49_v11   ;;  %109 = vperm.xlu0 %2057, %v48_v12  }
  0x1c   :  { %2018 = vmatpush.msra.mxu3 %v321_v40 }
  0x22   :  { %124 = vperm.xlu2 %2059, %v53_v13  }
  0x23   :  { %121 = vperm.xlu1 %2058, %v52_v14   ;;  %118 = vperm.xlu0 %2057, %v51_v15  }
  0x2a   :  { %133 = vperm.xlu2 %2059, %v56_v16  }
  0x2b   :  { %130 = vperm.xlu1 %2058, %v55_v17   ;;  %127 = vperm.xlu0 %2057, %v54_v18  }
  0x32   :  { %142 = vperm.xlu2 %2059, %v59_v19  }
  0x33   :  { %139 = vperm.xlu1 %2058, %v58_v20   ;;  %136 = vperm.xlu0 %2057, %v57_v21  }
  0x3a   :  { %151 = vperm.xlu2 %2059, %v62_v22  }
  0x3b   :  { %148 = vperm.xlu1 %2058, %v61_v23   ;;  %145 = vperm.xlu0 %2057, %v60_v24  }
  0x42   :  { %160 = vperm.xlu2 %2059, %v65_v25  }
  0x43   :  { %157 = vperm.xlu1 %2058, %v64_v26   ;;  %154 = vperm.xlu0 %2057, %v63_v27  }
  0x4a   :  { %169 = vperm.xlu2 %2059, %v68_v29  }
  0x4b   :  { %166 = vperm.xlu1 %2058, %v67_v30   ;;  %163 = vperm.xlu0 %2057, %v66_v31  }
  0x52   :  { %178 = vperm.xlu2 %2059, %v71_v35  }
  0x53   :  { %175 = vperm.xlu1 %2058, %v70_v36   ;;  %172 = vperm.xlu0 %2057, %v69_v37  }
  0x5a   :  { %187 = vperm.xlu2 %2059, %v74_v41  }
  0x5b   :  { %184 = vperm.xlu1 %2058, %v73_v42   ;;  %181 = vperm.xlu0 %2057, %v72_v43  }
  0x5c   :  { %v95_v48 = vpop.permute.xlu2 %94 }
  0x5d   :  { %vm205_vm6 = vcmp.eq.s32.totalorder %v95_v48, %v2588_v50 }
  0x5e   :  { %v1931_v4 = vsel %vm205_vm6, 1.0, %v2381_v54 }
  0x62   :  { %196 = vperm.xlu2 %2059, %v77_v44  }
  0x63   :  { %193 = vperm.xlu1 %2058, %v76_v45   ;;  %190 = vperm.xlu0 %2057, %v75_v46  }
  0x64   :  { %v98_v51 = vpop.permute.xlu2 %97 }
  0x65   :  { %vm206_vm7 = vcmp.eq.s32.totalorder %v98_v51, %v2588_v50 }
  0x66   :  { %v1932_v10 = vsel %vm206_vm7, 1.0, %v2381_v54 }
  0x6b   :  { %199 = vperm.xlu0 %2057, %v78_v47  }
  0x6c   :  { %v107_v58 = vpop.permute.xlu2 %106 }
  0x6d   :  { %vm209_vm11 = vcmp.eq.s32.totalorder %v107_v58, %v2588_v50 }
  0x6e   :  { %v1935_v20 = vsel %vm209_vm11, 1.0, %v2381_v54 }
  0x74   :  { %v116_v63 = vpop.permute.xlu2 %115 }
  0x75   :  { %v89_v52 = vpop.permute.xlu1 %88  ;;  %v83_v53 = vpop.permute.xlu0 %82 }
  0x76   :  { %vm201_vm2 = vcmp.eq.s32.totalorder %v83_v53, %v2588_v50  ;;  %vm203_vm4 = vcmp.eq.s32.totalorder %v89_v52, %v2588_v50 }
  0x77   :  { %v1927_v55 = vsel %vm201_vm2, 1.0, %v2381_v54  ;;  %v1929_v60 = vsel %vm203_vm4, 1.0, %v2381_v54  ;;  %vm212_vm2 = vcmp.eq.s32.totalorder %v116_v63, %v2588_v50 }
  0x78   :  { %1968 = vmatmul.msk.f32.vlgmr.msra.gmra.mxu0 %vm328_vm1, %v1927_v55  ;;  %v1938_v29 = vsel %vm212_vm2, 1.0, %v2381_v54 }
  0x7c   :  { %v2603_v3 = vpop.permute.xlu2 %124 }
  0x7d   :  { %v92_v56 = vpop.permute.xlu1 %91  ;;  %v86_v57 = vpop.permute.xlu0 %85 }
  0x7e   :  { %vm202_vm3 = vcmp.eq.s32.totalorder %v86_v57, %v2588_v50  ;;  %vm204_vm5 = vcmp.eq.s32.totalorder %v92_v56, %v2588_v50 }
  0x7f   :  { %v1928_v59 = vsel %vm202_vm3, 1.0, %v2381_v54  ;;  %v1930_v2 = vsel %vm204_vm5, 1.0, %v2381_v54 }
  0x80   :  { %1969 = vmatmul.msk.f32.gmra.mxu0 %vm328_vm1, %v1928_v59 }
  0x84   :  { %v2608_v7 = vpop.permute.xlu2 %133 }
  0x85   :  { %v104_v61 = vpop.permute.xlu1 %103  ;;  %v101_v62 = vpop.permute.xlu0 %100 }
  0x86   :  { %vm207_vm8 = vcmp.eq.s32.totalorder %v101_v62, %v2588_v50  ;;  %vm208_vm9 = vcmp.eq.s32.totalorder %v104_v61, %v2588_v50 }
  0x87   :  { %v1933_v13 = vsel %vm207_vm8, 1.0, %v2381_v54  ;;  %v1934_v16 = vsel %vm208_vm9, 1.0, %v2381_v54  ;;  %vm215_vm8 = vcmp.eq.s32.totalorder %v2603_v3, %v2588_v50 }
  0x88   :  { %1970 = vmatmul.msk.f32.gmra.mxu0 %vm328_vm1, %v1929_v60  ;;  %v1941_v38 = vsel %vm215_vm8, 1.0, %v2381_v54 }
  0x8c   :  { %v2622_v14 = vpop.permute.xlu2 %142 }
  0x8d   :  { %v113_v0 = vpop.permute.xlu1 %112  ;;  %v110_v1 = vpop.permute.xlu0 %109 }
  0x8e   :  { %vm210_vm13 = vcmp.eq.s32.totalorder %v110_v1, %v2588_v50  ;;  %vm211_vm15 = vcmp.eq.s32.totalorder %v113_v0, %v2588_v50 }
  0x8f   :  { %v1936_v23 = vsel %vm210_vm13, 1.0, %v2381_v54  ;;  %v1937_v26 = vsel %vm211_vm15, 1.0, %v2381_v54 }
  0x90   :  { %1971 = vmatmul.msk.f32.gmra.mxu0 %vm328_vm1, %v1930_v2 }
  0x94   :  { %v152_v19 = vpop.permute.xlu2 %151 }
  0x95   :  { %v122_v5 = vpop.permute.xlu1 %121  ;;  %v119_v6 = vpop.permute.xlu0 %118  ;;  %vm224_vm12 = vcmp.eq.s32.totalorder %v152_v19, %v2588_v50 }
  0x96   :  { %v1950_v21 = vsel %vm224_vm12, 1.0, %v2381_v54  ;;  %vm213_vm4 = vcmp.eq.s32.totalorder %v119_v6, %v2588_v50  ;;  %vm214_vm6 = vcmp.eq.s32.totalorder %v122_v5, %v2588_v50 }
  0x97   :  { %v1939_v32 = vsel %vm213_vm4, 1.0, %v2381_v54  ;;  %v1940_v35 = vsel %vm214_vm6, 1.0, %v2381_v54 }
  0x98   :  { %1972 = vmatmul.msk.f32.gmra.mxu0 %vm328_vm1, %v1931_v4 }
  0x9c   :  { %v161_v28 = vpop.permute.xlu2 %160 }
  0x9d   :  { %v2610_v8 = vpop.permute.xlu1 %130  ;;  %v2612_v9 = vpop.permute.xlu0 %127  ;;  %vm227_vm3 = vcmp.eq.s32.totalorder %v161_v28, %v2588_v50 }
  0x9e   :  { %v1953_v30 = vsel %vm227_vm3, 1.0, %v2381_v54  ;;  %vm217_vm12 = vcmp.eq.s32.totalorder %v2610_v8, %v2588_v50 }
  0x9f   :  { %v1943_v45 = vsel %vm217_vm12, 1.0, %v2381_v54 }
  0xa0   :  { %1973 = vmatmul.msk.f32.gmra.mxu0 %vm328_vm1, %v1932_v10 }
  0xa4   :  { %v170_v37 = vpop.permute.xlu2 %169 }
  0xa5   :  { %v2617_v11 = vpop.permute.xlu1 %139  ;;  %v2619_v12 = vpop.permute.xlu0 %136  ;;  %vm230_vm9 = vcmp.eq.s32.totalorder %v170_v37, %v2588_v50 }
  0xa6   :  { %v1956_v39 = vsel %vm230_vm9, 1.0, %v2381_v54  ;;  %vm220_vm3 = vcmp.eq.s32.totalorder %v2617_v11, %v2588_v50 }
  0xa7   :  { %v1946_v60 = vsel %vm220_vm3, 1.0, %v2381_v54 }
  0xa8   :  { %1974 = vmatmul.msk.f32.gmra.mxu0 %vm328_vm1, %v1933_v13 }
  0xac   :  { %v179_v47 = vpop.permute.xlu2 %178 }
  0xad   :  { %v149_v15 = vpop.permute.xlu1 %148  ;;  %v2629_v18 = vpop.permute.xlu0 %145  ;;  %vm233_vm15 = vcmp.eq.s32.totalorder %v179_v47, %v2588_v50 }
  0xae   :  { %vm223_vm10 = vcmp.eq.s32.totalorder %v149_v15, %v2588_v50  ;;  %v1959_v52 = vsel %vm233_vm15, 1.0, %v2381_v54  ;;  %vm1356_vm15 = vcmask 523264  }
  0xaf   :  { %v1949_v17 = vsel %vm223_vm10, 1.0, %v2381_v54  ;;  %vm216_vm10 = vcmp.eq.s32.totalorder %v2612_v9, %v2588_v50 }
  0xb0   :  { %1975 = vmatmul.msk.f32.gmra.mxu0 %vm328_vm1, %v1934_v16  ;;  %1990 = vmatmul.msk.f32.vlgmr.msra.gmra.mxu3 %vm328_vm1, %v1949_v17  ;;  %v1942_v41 = vsel %vm216_vm10, 1.0, %v2381_v54  ;;  %v2754_v16 = vshrl.u32 %v79_v49, 7 }
  0xb2   :  { %vm794_vm12 = vcmp.lt.s32.totalorder %v2754_v16, 5 }
  0xb4   :  { %v188_v62 = vpop.permute.xlu2 %187 }
  0xb5   :  { %v155_v22 = vpop.permute.xlu0 %154  ;;  %v158_v25 = vpop.permute.xlu1 %157  ;;  %vm236_vm6 = vcmp.eq.s32.totalorder %v188_v62, %v2588_v50 }
  0xb6   :  { %vm225_vm14 = vcmp.eq.s32.totalorder %v155_v22, %v2588_v50  ;;  %vm226_vm0 = vcmp.eq.s32.totalorder %v158_v25, %v2588_v50  ;;  %v1962_v1 = vsel %vm236_vm6, 1.0, %v2381_v54 }
  0xb7   :  { %v1951_v24 = vsel %vm225_vm14, 1.0, %v2381_v54  ;;  %v1952_v27 = vsel %vm226_vm0, 1.0, %v2381_v54  ;;  %vm218_vm14 = vcmp.eq.s32.totalorder %v2608_v7, %v2588_v50  ;;  %vm219_vm0 = vcmp.eq.s32.totalorder %v2619_v12, %v2588_v50 }
  0xb8   :  { %1976 = vmatmul.msk.f32.gmra.mxu0 %vm328_vm1, %v1935_v20  ;;  %1991 = vmatmul.msk.f32.gmra.mxu3 %vm328_vm1, %v1950_v21  ;;  %v1944_v51 = vsel %vm218_vm14, 1.0, %v2381_v54  ;;  %v1945_v56 = vsel %vm219_vm0, 1.0, %v2381_v54  ;;  %vm1315_vm14 = vcmask 261120   ;;  %vm1397_vm0 = vcmask 785408  }
  0xbc   :  { %v197_v9 = vpop.permute.xlu2 %196 }
  0xbd   :  { %v164_v31 = vpop.permute.xlu0 %163  ;;  %v167_v34 = vpop.permute.xlu1 %166  ;;  %vm239_vm10 = vcmp.eq.s32.totalorder %v197_v9, %v2588_v50 }
  0xbe   :  { %vm228_vm5 = vcmp.eq.s32.totalorder %v164_v31, %v2588_v50  ;;  %vm229_vm7 = vcmp.eq.s32.totalorder %v167_v34, %v2588_v50  ;;  %v1965_v11 = vsel %vm239_vm10, 1.0, %v2381_v54 }
  0xbf   :  { %v1954_v33 = vsel %vm228_vm5, 1.0, %v2381_v54  ;;  %v1955_v36 = vsel %vm229_vm7, 1.0, %v2381_v54  ;;  %vm221_vm5 = vcmp.eq.s32.totalorder %v2622_v14, %v2588_v50  ;;  %vm222_vm7 = vcmp.eq.s32.totalorder %v2629_v18, %v2588_v50 }
  0xc0   :  { %1977 = vmatmul.msk.f32.gmra.mxu0 %vm328_vm1, %v1936_v23  ;;  %1992 = vmatmul.msk.f32.gmra.mxu3 %vm328_vm1, %v1951_v24  ;;  %v1947_v0 = vsel %vm221_vm5, 1.0, %v2381_v54  ;;  %v1948_v4 = vsel %vm222_vm7, 1.0, %v2381_v54 }
  0xc5   :  { %v173_v40 = vpop.permute.xlu0 %172  ;;  %v176_v43 = vpop.permute.xlu1 %175 }
  0xc6   :  { %vm231_vm11 = vcmp.eq.s32.totalorder %v173_v40, %v2588_v50  ;;  %vm232_vm13 = vcmp.eq.s32.totalorder %v176_v43, %v2588_v50 }
  0xc7   :  { %v1957_v42 = vsel %vm231_vm11, 1.0, %v2381_v54  ;;  %v1958_v46 = vsel %vm232_vm13, 1.0, %v2381_v54  ;;  %vm632_vm13 = vcmp.lt.s32.totalorder %v2754_v16, 7 }
  0xc8   :  { %1978 = vmatmul.msk.f32.gmra.mxu0 %vm328_vm1, %v1937_v26  ;;  %1993 = vmatmul.msk.f32.gmra.mxu3 %vm328_vm1, %v1952_v27 }
  0xcd   :  { %v182_v53 = vpop.permute.xlu0 %181  ;;  %v185_v58 = vpop.permute.xlu1 %184 }
  0xce   :  { %vm234_vm2 = vcmp.eq.s32.totalorder %v182_v53, %v2588_v50  ;;  %vm235_vm4 = vcmp.eq.s32.totalorder %v185_v58, %v2588_v50 }
  0xcf   :  { %v1960_v57 = vsel %vm234_vm2, 1.0, %v2381_v54  ;;  %v1961_v61 = vsel %vm235_vm4, 1.0, %v2381_v54  ;;  %vm1712_vm4 = vcmask 195584  }
  0xd0   :  { %1979 = vmatmul.msk.f32.gmra.mxu0 %vm328_vm1, %v1938_v29  ;;  %1994 = vmatmul.msk.f32.gmra.mxu3 %vm328_vm1, %v1953_v30 }
  0xd5   :  { %v191_v2 = vpop.permute.xlu0 %190  ;;  %v194_v6 = vpop.permute.xlu1 %193 }
  0xd6   :  { %vm237_vm8 = vcmp.eq.s32.totalorder %v191_v2, %v2588_v50  ;;  %vm238_vm9 = vcmp.eq.s32.totalorder %v194_v6, %v2588_v50 }
  0xd7   :  { %v1963_v5 = vsel %vm237_vm8, 1.0, %v2381_v54  ;;  %v1964_v8 = vsel %vm238_vm9, 1.0, %v2381_v54 }
  0xd8   :  { %1980 = vmatmul.msk.f32.gmra.mxu0 %vm328_vm1, %v1939_v32  ;;  %1995 = vmatmul.msk.f32.gmra.mxu3 %vm328_vm1, %v1954_v33 }
  0xdd   :  { %v200_v12 = vpop.permute.xlu0 %199 }
  0xde   :  { %vm240_vm11 = vcmp.eq.s32.totalorder %v200_v12, %v2588_v50 }
  0xdf   :  { %v1966_v15 = vsel %vm240_vm11, 1.0, %v2381_v54 }
  0xe0   :  { %1981 = vmatmul.msk.f32.gmra.mxu0 %vm328_vm1, %v1940_v35  ;;  %1996 = vmatmul.msk.f32.gmra.mxu3 %vm328_vm1, %v1955_v36 }
  0xe8   :  { %1982 = vmatmul.msk.f32.gmra.mxu0 %vm328_vm1, %v1941_v38  ;;  %1997 = vmatmul.msk.f32.gmra.mxu3 %vm328_vm1, %v1956_v39 }
  0xf0   :  { %1983 = vmatmul.msk.f32.gmra.mxu0 %vm328_vm1, %v1942_v41  ;;  %1998 = vmatmul.msk.f32.gmra.mxu3 %vm328_vm1, %v1957_v42 }
  0xf5   :  { %v2686_v44 = vpop.f32.mrf.mxu0 }
  0xf8   :  { %1984 = vmatmul.msk.f32.gmra.mxu0 %vm328_vm1, %v1943_v45  ;;  %1999 = vmatmul.msk.f32.gmra.mxu3 %vm328_vm1, %v1958_v46 }
  0xfd   :  { %v2695_v48 = vpop.f32.mrf.mxu0 }
  0xfe   :  { %v674_v12 = vrot.slane %v2695_v48, 2 }
 0x100   :  { %1985 = vmatmul.msk.f32.gmra.mxu0 %vm328_vm1, %v1944_v51  ;;  %2000 = vmatmul.msk.f32.gmra.mxu3 %vm328_vm1, %v1959_v52 }
 0x105   :  { %v2704_v55 = vpop.f32.mrf.mxu0 }
 0x106   :  { %v675_v19 = vrot.slane %v2704_v55, 2  ;;  %v756_v20 = vrot.slane %v2704_v55, 3  ;;  %v592_v24 = vrot.slane %v2704_v55, 1 }
 0x108   :  { %1986 = vmatmul.msk.f32.gmra.mxu0 %vm328_vm1, %v1945_v56  ;;  %2001 = vmatmul.msk.f32.gmra.mxu3 %vm328_vm1, %v1960_v57 }
 0x10d   :  { %v2713_v59 = vpop.f32.mrf.mxu0 }
 0x10e   :  { %v676_v17 = vrot.slane %v2713_v59, 2  ;;  %v757_v18 = vrot.slane %v2713_v59, 3  ;;  %v593_v21 = vrot.slane %v2713_v59, 1 }
 0x110   :  { %1987 = vmatmul.msk.f32.gmra.mxu0 %vm328_vm1, %v1946_v60  ;;  %2002 = vmatmul.msk.f32.gmra.mxu3 %vm328_vm1, %v1961_v61  ;;  %v831_v29 = vsel %vm794_vm12, %v756_v20, %v757_v18  ;;  %v669_v34 = vsel %vm632_vm13, %v592_v24, %v593_v21 }
 0x115   :  { %v2722_v63 = vpop.f32.mrf.mxu0 }
 0x116   :  { %v677_v37 = vrot.slane %v2722_v63, 2  ;;  %v758_v38 = vrot.slane %v2722_v63, 3  ;;  %v594_v39 = vrot.slane %v2722_v63, 1 }
 0x118   :  { %1988 = vmatmul.msk.f32.gmra.mxu0 %vm328_vm1, %v1947_v0  ;;  %2003 = vmatmul.msk.f32.gmra.mxu3 %vm328_vm1, %v1962_v1  ;;  %v830_v47 = vsel %vm794_vm12, %v757_v18, %v758_v38  ;;  %v668_v57 = vsel %vm632_vm13, %v593_v21, %v594_v39  ;;  %v591_v18 = vrot.slane %v2695_v48, 1 }
 0x11d   :  { %v2731_v3 = vpop.f32.mrf.mxu0 }
 0x120   :  { %1989 = vmatmul.msk.f32.gmra.mxu0 %vm328_vm1, %v1948_v4  ;;  %2004 = vmatmul.msk.f32.gmra.mxu3 %vm328_vm1, %v1963_v5 }
 0x125   :  { %v2738_v7 = vpop.f32.mrf.mxu0 }
 0x128   :  { %2005 = vmatmul.msk.f32.gmra.mxu3 %vm328_vm1, %v1964_v8 }
 0x12d   :  { %v2743_v10 = vpop.f32.mrf.mxu0 }
 0x130   :  { %2006 = vmatmul.msk.f32.gmra.mxu3 %vm328_vm1, %v1965_v11 }
 0x133   :  { %v2747_v13 = vpop.f32.mrf.mxu3 }
 0x134   :  { %v776_v54 = vrot.slane %v2747_v13, 3  ;;  %v612_v25 = vrot.slane %v2747_v13, 1  ;;  %v695_v26 = vrot.slane %v2747_v13, 2 }
 0x135   :  { %v2750_v14 = vpop.f32.mrf.mxu0 }
 0x138   :  { %2007 = vmatmul.msk.f32.gmra.mxu3 %vm328_vm1, %v1966_v15  ;;  %vm713_vm1 = vcmp.lt.s32.totalorder %v2754_v16, 6  ;;  %v755_v15 = vrot.slane %v2695_v48, 3 }
 0x139   :  { %v750_v30 = vsel %vm713_vm1, %v675_v19, %v676_v17  ;;  %v749_v51 = vsel %vm713_vm1, %v676_v17, %v677_v37  ;;  %v3798_v17 = vrot.slane %v2686_v44, 1 }
 0x13b   :  { %v2762_v50 = vpop.f32.mrf.mxu3 }
 0x13c   :  { %v613_v49 = vrot.slane %v2762_v50, 1  ;;  %v696_v22 = vrot.slane %v2762_v50, 2  ;;  %v777_v23 = vrot.slane %v2762_v50, 3 }
 0x13d   :  { %v2772_v27 = vpop.f32.mrf.mxu0 }
 0x13e   :  { %v811_v28 = vsel %vm794_vm12, %v776_v54, %v777_v23  ;;  %v730_v32 = vsel %vm713_vm1, %v695_v26, %v696_v22  ;;  %v649_v33 = vsel %vm632_vm13, %v612_v25, %v613_v49 }
 0x13f   :  { %v2070_v31 = vpack.i.bf16 %v811_v28, %v831_v29  ;;  %v2065_v35 = vpack.i.bf16 %v730_v32, %v750_v30  ;;  %v2060_v36 = vpack.i.bf16 %v649_v33, %v669_v34 }
 0x141   :  { %2071 = vrot.lane.b32.xlu0 %v2070_v31, %s2382_s0  ;;  %2066 = vrot.lane.b32.xlu2 %v2065_v35, %s2383_s15 }
 0x142   :  { %2061 = vrot.lane.b32.xlu1 %v2060_v36, %s2384_s16 }
 0x143   :  { %v2806_v40 = vpop.f32.mrf.mxu3 }
 0x144   :  { %v614_v41 = vrot.slane %v2806_v40, 1  ;;  %v697_v42 = vrot.slane %v2806_v40, 2  ;;  %v778_v43 = vrot.slane %v2806_v40, 3 }
 0x145   :  { %v2811_v45 = vpop.f32.mrf.mxu0 }
 0x146   :  { %v2817_v46 = vsel %vm794_vm12, %v777_v23, %v778_v43  ;;  %v729_v53 = vsel %vm713_vm1, %v696_v22, %v697_v42  ;;  %v648_v56 = vsel %vm632_vm13, %v613_v49, %v614_v41  ;;  %v3796_v49 = vrot.slane %v2686_v44, 2 }
 0x147   :  { %v2115_v52 = vpack.i.bf16 %v2817_v46, %v830_v47  ;;  %v2105_v58 = vpack.i.bf16 %v729_v53, %v749_v51  ;;  %v2095_v60 = vpack.i.bf16 %v648_v56, %v668_v57  ;;  %v3797_v22 = vrot.slane %v2686_v44, 3 }
 0x148   :  { %v752_v35 = vsel %vm713_vm1, %v3796_v49, %v674_v12  ;;  %v671_v51 = vsel %vm632_vm13, %v3798_v17, %v591_v18 }
 0x149   :  { %v833_v34 = vsel %vm794_vm12, %v3797_v22, %v755_v15 }
 0x14b   :  { %v2858_v9 = vpop.f32.mrf.mxu3 }
 0x14d   :  { %v2840_v61 = vpop.f32.mrf.mxu0 }
 0x153   :  { %v2866_v21 = vpop.f32.mrf.mxu3 }
 0x155   :  { %v2842_v62 = vpop.f32.mrf.mxu0 }
 0x15d   :  { %v2844_v0 = vpop.f32.mrf.mxu0 }
 0x15e   :  { %3809 = vst [vmem:[#allocation5_spill] sm:$0xff] %v2844_v0 }
 0x165   :  { %v2846_v1 = vpop.f32.mrf.mxu0 }
 0x166   :  { %3810 = vst [vmem:[#allocation6_spill] sm:$0xff] %v2846_v1 }
 0x16d   :  { %v2848_v2 = vpop.f32.mrf.mxu0 }
 0x16e   :  { %3811 = vst [vmem:[#allocation7_spill] sm:$0xff] %v2848_v2 }
 0x175   :  { %v2850_v4 = vpop.f32.mrf.mxu0 }
 0x176   :  { %3812 = vst [vmem:[#allocation8_spill] sm:$0xff] %v2850_v4  ;;  %v770_v17 = vrot.slane %v2850_v4, 3 }
 0x17d   :  { %v2852_v5 = vpop.f32.mrf.mxu0 }
 0x17e   :  { %3813 = vst [vmem:[#allocation9_spill] sm:$0xff] %v2852_v5 }
 0x185   :  { %v2854_v6 = vpop.f32.mrf.mxu0 }
 0x18d   :  { %v2856_v8 = vpop.f32.mrf.mxu0 }
 0x195   :  { %v2860_v11 = vpop.f32.mrf.mxu0 }
 0x196   :  { %v3794_v23 = vrot.slane %v2860_v11, 1  ;;  %v3793_v28 = vrot.slane %v2860_v11, 2  ;;  %v3795_v30 = vrot.slane %v2860_v11, 3 }
 0x19d   :  { %v2872_v29 = vpop.f32.mrf.mxu0 }
 0x19e   :  { %v611_v31 = vrot.slane %v2872_v29, 1  ;;  %v694_v32 = vrot.slane %v2872_v29, 2  ;;  %v775_v33 = vrot.slane %v2872_v29, 3 }
 0x1a0   :  { %v813_v36 = vsel %vm794_vm12, %v3795_v30, %v775_v33  ;;  %v732_v46 = vsel %vm713_vm1, %v3793_v28, %v694_v32  ;;  %v651_v47 = vsel %vm632_vm13, %v3794_v23, %v611_v31  ;;  %v2905_v28 = vpop.f32.mrf.mxu3  ;;  %v812_v23 = vsel %vm794_vm12, %v775_v33, %v776_v54 }
 0x1a1   :  { %v2085_v53 = vpack.i.bf16 %v813_v36, %v833_v34  ;;  %v2080_v56 = vpack.i.bf16 %v732_v46, %v752_v35  ;;  %v2075_v57 = vpack.i.bf16 %v651_v47, %v671_v51  ;;  %v731_v34 = vsel %vm713_vm1, %v694_v32, %v695_v26 }
 0x1a2   :  { %v650_v35 = vsel %vm632_vm13, %v611_v31, %v612_v25  ;;  %v832_v36 = vsel %vm794_vm12, %v755_v15, %v756_v20  ;;  %v751_v54 = vsel %vm713_vm1, %v674_v12, %v675_v19  ;;  %v670_v26 = vsel %vm632_vm13, %v591_v18, %v592_v24 }
 0x1a3   :  { %2086 = vrot.lane.b32.xlu0 %v2085_v53, %s2382_s0  ;;  %2081 = vrot.lane.b32.xlu2 %v2080_v56, %s2383_s15  ;;  %v2110_v33 = vpack.i.bf16 %v812_v23, %v832_v36  ;;  %v2100_v46 = vpack.i.bf16 %v731_v34, %v751_v54  ;;  %v2090_v32 = vpack.i.bf16 %v650_v35, %v670_v26  ;;  %v698_v25 = vrot.slane %v2858_v9, 2 }
 0x1a4   :  { %2076 = vrot.lane.b32.xlu1 %v2075_v57, %s2384_s16  ;;  %v779_v19 = vrot.slane %v2858_v9, 3  ;;  %v615_v12 = vrot.slane %v2858_v9, 1  ;;  %v678_v24 = vrot.slane %v2731_v3, 2  ;;  %v759_v15 = vrot.slane %v2731_v3, 3 }
 0x1a5   :  { %v595_v18 = vrot.slane %v2731_v3, 1  ;;  %v699_v51 = vrot.slane %v2866_v21, 2  ;;  %v760_v57 = vrot.slane %v2738_v7, 3 }
 0x1a6   :  { %v809_v23 = vsel %vm794_vm12, %v778_v43, %v779_v19  ;;  %v748_v43 = vsel %vm713_vm1, %v677_v37, %v678_v24  ;;  %v679_v37 = vrot.slane %v2738_v7, 2 }
 0x1a7   :  { %v727_v35 = vsel %vm713_vm1, %v698_v25, %v699_v51  ;;  %v828_v54 = vsel %vm794_vm12, %v759_v15, %v760_v57 }
 0x1a8   :  { %v2934_v20 = vpop.f32.mrf.mxu3 }
 0x1ab   :  { %2111 = vrot.lane.b32.xlu0 %v2110_v33, %s2382_s0  ;;  %2101 = vrot.lane.b32.xlu2 %v2100_v46, %s2383_s15  ;;  %v747_v33 = vsel %vm713_vm1, %v678_v24, %v679_v37  ;;  %v761_v24 = vrot.slane %v2743_v10, 3 }
 0x1ac   :  { %2091 = vrot.lane.b32.xlu1 %v2090_v32, %s2384_s16  ;;  %v2140_v26 = vpack.i.bf16 %v727_v35, %v747_v33  ;;  %v701_v35 = vrot.slane %v2934_v20, 2 }
 0x1b0   :  { %v2971_v53 = vpop.f32.mrf.mxu3 }
 0x1b3   :  { %2116 = vrot.lane.b32.xlu0 %v2115_v52, %s2382_s0  ;;  %2106 = vrot.lane.b32.xlu2 %v2105_v58, %s2383_s15  ;;  %v728_v52 = vsel %vm713_vm1, %v697_v42, %v698_v25  ;;  %v647_v58 = vsel %vm632_vm13, %v614_v41, %v615_v12  ;;  %v667_v42 = vsel %vm632_vm13, %v594_v39, %v595_v18  ;;  %v780_v41 = vrot.slane %v2866_v21, 3 }
 0x1b4   :  { %2096 = vrot.lane.b32.xlu1 %v2095_v60, %s2384_s16  ;;  %v829_v60 = vsel %vm794_vm12, %v758_v38, %v759_v15  ;;  %v2125_v47 = vpack.i.bf16 %v728_v52, %v748_v43  ;;  %v2120_v56 = vpack.i.bf16 %v647_v58, %v667_v42  ;;  %v616_v38 = vrot.slane %v2866_v21, 1 }
 0x1b5   :  { %v2130_v31 = vpack.i.bf16 %v809_v23, %v829_v60  ;;  %v596_v39 = vrot.slane %v2738_v7, 1  ;;  %v808_v34 = vsel %vm794_vm12, %v779_v19, %v780_v41  ;;  %v700_v23 = vrot.slane %v2905_v28, 2 }
 0x1b6   :  { %v646_v36 = vsel %vm632_vm13, %v615_v12, %v616_v38  ;;  %v2145_v46 = vpack.i.bf16 %v808_v34, %v828_v54  ;;  %v781_v19 = vrot.slane %v2905_v28, 3  ;;  %v617_v25 = vrot.slane %v2905_v28, 1 }
 0x1b7   :  { %v666_v32 = vsel %vm632_vm13, %v595_v18, %v596_v39  ;;  %v680_v12 = vrot.slane %v2743_v10, 2  ;;  %v597_v18 = vrot.slane %v2743_v10, 1  ;;  %v726_v60 = vsel %vm713_vm1, %v699_v51, %v700_v23 }
 0x1b8   :  { %v2135_v52 = vpack.i.bf16 %v646_v36, %v666_v32  ;;  %v2999_v15 = vpop.f32.mrf.mxu3  ;;  %v807_v58 = vsel %vm794_vm12, %v780_v41, %v781_v19  ;;  %v645_v43 = vsel %vm632_vm13, %v616_v38, %v617_v25  ;;  %v782_v41 = vrot.slane %v2934_v20, 3 }
 0x1b9   :  { %v665_v34 = vsel %vm632_vm13, %v596_v39, %v597_v18  ;;  %v618_v51 = vrot.slane %v2934_v20, 1  ;;  %v681_v38 = vrot.slane %v2750_v14, 2  ;;  %v725_v33 = vsel %vm713_vm1, %v700_v23, %v701_v35 }
 0x1ba   :  { %v2150_v36 = vpack.i.bf16 %v645_v43, %v665_v34  ;;  %v806_v54 = vsel %vm794_vm12, %v781_v19, %v782_v41  ;;  %v702_v43 = vrot.slane %v2971_v53, 2  ;;  %v783_v19 = vrot.slane %v2971_v53, 3 }
 0x1bb   :  { %2131 = vrot.lane.b32.xlu0 %v2130_v31, %s2382_s0  ;;  %2126 = vrot.lane.b32.xlu2 %v2125_v47, %s2383_s15  ;;  %v827_v31 = vsel %vm794_vm12, %v760_v57, %v761_v24  ;;  %v746_v47 = vsel %vm713_vm1, %v679_v37, %v680_v12  ;;  %v762_v37 = vrot.slane %v2750_v14, 3  ;;  %v598_v57 = vrot.slane %v2750_v14, 1 }
 0x1bc   :  { %2121 = vrot.lane.b32.xlu1 %v2120_v56, %s2384_s16  ;;  %v2160_v42 = vpack.i.bf16 %v807_v58, %v827_v31  ;;  %v2155_v56 = vpack.i.bf16 %v726_v60, %v746_v47  ;;  %v745_v32 = vsel %vm713_vm1, %v680_v12, %v681_v38  ;;  %v619_v23 = vrot.slane %v2971_v53, 1 }
 0x1bd   :  { %v2170_v58 = vpack.i.bf16 %v725_v33, %v745_v32  ;;  %v664_v60 = vsel %vm632_vm13, %v597_v18, %v598_v57  ;;  %v763_v12 = vrot.slane %v2772_v27, 3  ;;  %v805_v18 = vsel %vm794_vm12, %v782_v41, %v783_v19 }
 0x1be   :  { %v724_v47 = vsel %vm713_vm1, %v701_v35, %v702_v43  ;;  %v703_v41 = vrot.slane %v2999_v15, 2  ;;  %v784_v35 = vrot.slane %v2999_v15, 3  ;;  %v600_v32 = vrot.slane %v2811_v45, 1 }
 0x1bf   :  { %v825_v34 = vsel %vm794_vm12, %v762_v37, %v763_v12 }
 0x1c0   :  { %v3024_v39 = vpop.f32.mrf.mxu3 }
 0x1c3   :  { %2146 = vrot.lane.b32.xlu0 %v2145_v46, %s2382_s0  ;;  %2141 = vrot.lane.b32.xlu2 %v2140_v26, %s2383_s15  ;;  %v644_v46 = vsel %vm632_vm13, %v617_v25, %v618_v51  ;;  %v826_v26 = vsel %vm794_vm12, %v761_v24, %v762_v37  ;;  %v682_v25 = vrot.slane %v2772_v27, 2  ;;  %v599_v24 = vrot.slane %v2772_v27, 1 }
 0x1c4   :  { %2136 = vrot.lane.b32.xlu1 %v2135_v52, %s2384_s16  ;;  %v2175_v52 = vpack.i.bf16 %v806_v54, %v826_v26  ;;  %v2165_v31 = vpack.i.bf16 %v644_v46, %v664_v60  ;;  %v2190_v54 = vpack.i.bf16 %v805_v18, %v825_v34  ;;  %v683_v37 = vrot.slane %v2811_v45, 2  ;;  %v1452_v60 = vld [vmem:[%s3783_s2 + $0x70] sm:$0xff] }
 0x1c5   :  { %v663_v46 = vsel %vm632_vm13, %v598_v57, %v599_v24  ;;  %v1453_v57 = vld [vmem:[%s3783_s2 + $0x78] sm:$0xff]  ;;  %v662_v34 = vsel %vm632_vm13, %v599_v24, %v600_v32  ;;  %v684_v24 = vrot.slane %v2840_v61, 2 }
 0x1c6   :  { %1454 = vmatpush.msra.mxu1 %v1453_v57  ;;  %2019 = vmatpush.msra.mxu2 %v1453_v57 }
 0x1c7   :  { %2020 = vmatpush.msrb.mxu3 %v1453_v57  ;;  %v601_v57 = vrot.slane %v2840_v61, 1 }
 0x1c8   :  { %1455 = vmatpush.msra.mxu1 %v1452_v60  ;;  %2021 = vmatpush.msra.mxu2 %v1452_v60 }
 0x1c9   :  { %2022 = vmatpush.msrb.mxu3 %v1452_v60  ;;  %v1448_v60 = vld [vmem:[%s3783_s2 + $0x50] sm:$0xff] }
 0x1cb   :  { %2161 = vrot.lane.b32.xlu0 %v2160_v42, %s2382_s0  ;;  %2156 = vrot.lane.b32.xlu2 %v2155_v56, %s2383_s15  ;;  %v643_v42 = vsel %vm632_vm13, %v618_v51, %v619_v23  ;;  %v3053_v56 = vpop.f32.mrf.mxu3  ;;  %v620_v51 = vrot.slane %v2999_v15, 1 }
 0x1cc   :  { %2151 = vrot.lane.b32.xlu1 %v2150_v36, %s2384_s16  ;;  %v744_v36 = vsel %vm713_vm1, %v681_v38, %v682_v25  ;;  %v2180_v26 = vpack.i.bf16 %v643_v42, %v663_v46  ;;  %v764_v38 = vrot.slane %v2811_v45, 3  ;;  %v765_v46 = vrot.slane %v2840_v61, 3 }
 0x1cd   :  { %v2185_v33 = vpack.i.bf16 %v724_v47, %v744_v36  ;;  %v642_v18 = vsel %vm632_vm13, %v619_v23, %v620_v51  ;;  %v1450_v23 = vld [vmem:[%s3783_s2 + $0x60] sm:$0xff]  ;;  %v704_v36 = vrot.slane %v3024_v39, 2 }
 0x1d3   :  { %2176 = vrot.lane.b32.xlu0 %v2175_v52, %s2382_s0  ;;  %2171 = vrot.lane.b32.xlu2 %v2170_v58, %s2383_s15  ;;  %v804_v52 = vsel %vm794_vm12, %v783_v19, %v784_v35  ;;  %v723_v58 = vsel %vm713_vm1, %v702_v43, %v703_v41  ;;  %v824_v19 = vsel %vm794_vm12, %v763_v12, %v764_v38  ;;  %v3096_v12 = vpop.f32.mrf.mxu3 }
 0x1d4   :  { %2166 = vrot.lane.b32.xlu1 %v2165_v31, %s2384_s16  ;;  %v1451_v31 = vld [vmem:[%s3783_s2 + $0x68] sm:$0xff]  ;;  %v743_v43 = vsel %vm713_vm1, %v682_v25, %v683_v37  ;;  %v2205_v47 = vpack.i.bf16 %v804_v52, %v824_v19  ;;  %3814 = vst [vmem:[#allocation10_spill] sm:$0xff] %v3096_v12  ;;  %v621_v25 = vrot.slane %v3024_v39, 1 }
 0x1d5   :  { %v2200_v42 = vpack.i.bf16 %v723_v58, %v743_v43  ;;  %1456 = vmatpush.msra.mxu1 %v1451_v31  ;;  %2023 = vmatpush.msra.mxu2 %v1451_v31  ;;  %v722_v58 = vsel %vm713_vm1, %v703_v41, %v704_v36  ;;  %v742_v41 = vsel %vm713_vm1, %v683_v37, %v684_v24  ;;  %v622_v37 = vrot.slane %v3053_v56, 1 }
 0x1d6   :  { %2024 = vmatpush.msrb.mxu3 %v1451_v31  ;;  %v641_v31 = vsel %vm632_vm13, %v620_v51, %v621_v25  ;;  %v2215_v43 = vpack.i.bf16 %v722_v58, %v742_v41  ;;  %v705_v51 = vrot.slane %v3053_v56, 2 }
 0x1d7   :  { %1457 = vmatpush.msra.mxu1 %v1450_v23  ;;  %2025 = vmatpush.msra.mxu2 %v1450_v23 }
 0x1d8   :  { %2026 = vmatpush.msrb.mxu3 %v1450_v23  ;;  %v766_v23 = vrot.slane %v2842_v62, 3 }
 0x1da   :  { %v822_v41 = vsel %vm794_vm12, %v765_v46, %v766_v23 }
 0x1db   :  { %2191 = vrot.lane.b32.xlu0 %v2190_v54, %s2382_s0  ;;  %2186 = vrot.lane.b32.xlu2 %v2185_v33, %s2383_s15  ;;  %v785_v54 = vrot.slane %v3024_v39, 3  ;;  %v2195_v33 = vpack.i.bf16 %v642_v18, %v662_v34  ;;  %v1447_v18 = vld [vmem:[%s3783_s2 + $0x48] sm:$0xff] }
 0x1dc   :  { %2181 = vrot.lane.b32.xlu1 %v2180_v26, %s2384_s16  ;;  %v1449_v26 = vld [vmem:[%s3783_s2 + $0x58] sm:$0xff] }
 0x1dd   :  { %v803_v52 = vsel %vm794_vm12, %v784_v35, %v785_v54  ;;  %1458 = vmatpush.msra.mxu1 %v1449_v26  ;;  %2027 = vmatpush.msra.mxu2 %v1449_v26  ;;  %v823_v35 = vsel %vm794_vm12, %v764_v38, %v765_v46  ;;  %v1446_v38 = vld [vmem:[%s3783_s2 + $0x40] sm:$0xff] }
 0x1de   :  { %2028 = vmatpush.msrb.mxu3 %v1449_v26  ;;  %v2220_v19 = vpack.i.bf16 %v803_v52, %v823_v35  ;;  %v1445_v26 = vld [vmem:[%s3783_s2 + $0x38] sm:$0xff]  ;;  %v602_v52 = vrot.slane %v2842_v62, 1  ;;  %v640_v35 = vsel %vm632_vm13, %v621_v25, %v622_v37  ;;  %v706_v25 = vrot.slane %v3096_v12, 2 }
 0x1df   :  { %1459 = vmatpush.msra.mxu1 %v1448_v60  ;;  %2029 = vmatpush.msra.mxu2 %v1448_v60 }
 0x1e0   :  { %2030 = vmatpush.msrb.mxu3 %v1448_v60  ;;  %v721_v60 = vsel %vm713_vm1, %v704_v36, %v705_v51  ;;  %v660_v36 = vsel %vm632_vm13, %v601_v57, %v602_v52 }
 0x1e1   :  { %1460 = vmatpush.msra.mxu1 %v1447_v18  ;;  %2031 = vmatpush.msra.mxu2 %v1447_v18  ;;  %v2225_v46 = vpack.i.bf16 %v640_v35, %v660_v36 }
 0x1e2   :  { %2032 = vmatpush.msrb.mxu3 %v1447_v18 }
 0x1e3   :  { %2206 = vrot.lane.b32.xlu0 %v2205_v47, %s2382_s0  ;;  %2201 = vrot.lane.b32.xlu2 %v2200_v42, %s2383_s15  ;;  %v661_v47 = vsel %vm632_vm13, %v600_v32, %v601_v57  ;;  %v786_v42 = vrot.slane %v3053_v56, 3  ;;  %v685_v32 = vrot.slane %v2842_v62, 2  ;;  %v1442_v57 = vld [vmem:[%s3783_s2 + $0x20] sm:$0xff] }
 0x1e4   :  { %2196 = vrot.lane.b32.xlu1 %v2195_v33, %s2384_s16  ;;  %v2210_v34 = vpack.i.bf16 %v641_v31, %v661_v47  ;;  %v3136_v33 = vpop.f32.mrf.mxu3  ;;  %1461 = vmatpush.msra.mxu1 %v1446_v38  ;;  %v1444_v31 = vld [vmem:[%s3783_s2 + $0x30] sm:$0xff]  ;;  %v787_v47 = vrot.slane %v3096_v12, 3 }
 0x1e5   :  { %3815 = vst [vmem:[#allocation11_spill] sm:$0xff] %v3136_v33  ;;  %v802_v58 = vsel %vm794_vm12, %v785_v54, %v786_v42  ;;  %2033 = vmatpush.msra.mxu2 %v1446_v38  ;;  %2034 = vmatpush.msrb.mxu3 %v1446_v38  ;;  %v741_v18 = vsel %vm713_vm1, %v684_v24, %v685_v32  ;;  %v623_v24 = vrot.slane %v3096_v12, 1  ;;  %v767_v38 = vrot.slane %v2844_v0, 3 }
 0x1e6   :  { %1462 = vmatpush.msra.mxu1 %v1445_v26  ;;  %v2235_v54 = vpack.i.bf16 %v802_v58, %v822_v41  ;;  %v3173_v58 = vpop.permute.xlu2 %2066  ;;  %v801_v41 = vsel %vm794_vm12, %v786_v42, %v787_v47  ;;  %v788_v30 = vrot.slane %v3136_v33, 3 }
 0x1e7   :  { %2035 = vmatpush.msra.mxu2 %v1445_v26  ;;  %2036 = vmatpush.msrb.mxu3 %v1445_v26  ;;  %v603_v26 = vrot.slane %v2844_v0, 1 }
 0x1e8   :  { %1463 = vmatpush.msra.mxu1 %v1444_v31 }
 0x1e9   :  { %2037 = vmatpush.msra.mxu2 %v1444_v31  ;;  %2038 = vmatpush.msrb.mxu3 %v1444_v31  ;;  %v821_v31 = vsel %vm794_vm12, %v766_v23, %v767_v38  ;;  %v1439_v23 = vld [vmem:[%s3783_s2 + $0x8] sm:$0xff] }
 0x1ea   :  { %v2250_v42 = vpack.i.bf16 %v801_v41, %v821_v31  ;;  %v604_v41 = vrot.slane %v2846_v1, 1 }
 0x1eb   :  { %2221 = vrot.lane.b32.xlu0 %v2220_v19, %s2382_s0  ;;  %2216 = vrot.lane.b32.xlu2 %v2215_v43, %s2383_s15  ;;  %v2230_v19 = vpack.i.bf16 %v721_v60, %v741_v18  ;;  %v1443_v43 = vld [vmem:[%s3783_s2 + $0x28] sm:$0xff]  ;;  %v1441_v60 = vld [vmem:[%s3783_s2 + $0x18] sm:$0xff]  ;;  %v720_v18 = vsel %vm713_vm1, %v705_v51, %v706_v25  ;;  %v659_v51 = vsel %vm632_vm13, %v602_v52, %v603_v26  ;;  %v687_v52 = vrot.slane %v2846_v1, 2 }
 0x1ec   :  { %2211 = vrot.lane.b32.xlu1 %v2210_v34, %s2384_s16  ;;  %v686_v34 = vrot.slane %v2844_v0, 2  ;;  %1464 = vmatpush.msra.mxu1 %v1443_v43  ;;  %v3178_v35 = vpop.f32.mrf.mxu3 }
 0x1ed   :  { %2039 = vmatpush.msra.mxu2 %v1443_v43  ;;  %3816 = vst [vmem:[#allocation12_spill] sm:$0xff] %v3178_v35  ;;  %2040 = vmatpush.msrb.mxu3 %v1443_v43  ;;  %v768_v43 = vrot.slane %v2846_v1, 3  ;;  %v625_v22 = vrot.slane %v3178_v35, 1 }
 0x1ee   :  { %1465 = vmatpush.msra.mxu1 %v1442_v57  ;;  %v740_v36 = vsel %vm713_vm1, %v685_v32, %v686_v34  ;;  %v624_v32 = vrot.slane %v3136_v33, 1 }
 0x1ef   :  { %2041 = vmatpush.msra.mxu2 %v1442_v57  ;;  %2042 = vmatpush.msrb.mxu3 %v1442_v57  ;;  %v1438_v57 = vld [vmem:[%s3783_s2] sm:$0xff] }
 0x1f0   :  { %1466 = vmatpush.msra.mxu1 %v1441_v60 }
 0x1f1   :  { %2043 = vmatpush.msra.mxu2 %v1441_v60  ;;  %2044 = vmatpush.msrb.mxu3 %v1441_v60  ;;  %v739_v60 = vsel %vm713_vm1, %v686_v34, %v687_v52  ;;  %v688_v34 = vrot.slane %v2848_v2, 2 }
 0x1f3   :  { %2236 = vrot.lane.b32.xlu0 %v2235_v54, %s2382_s0  ;;  %2231 = vrot.lane.b32.xlu2 %v2230_v19, %s2383_s15  ;;  %v639_v54 = vsel %vm632_vm13, %v622_v37, %v623_v24  ;;  %v1440_v19 = vld [vmem:[%s3783_s2 + $0x10] sm:$0xff]  ;;  %v707_v37 = vrot.slane %v3136_v33, 2 }
 0x1f4   :  { %2226 = vrot.lane.b32.xlu1 %v2225_v46, %s2384_s16  ;;  %v2245_v46 = vpack.i.bf16 %v720_v18, %v740_v36  ;;  %v2240_v49 = vpack.i.bf16 %v639_v54, %v659_v51  ;;  %1467 = vmatpush.msra.mxu1 %v1440_v19  ;;  %v800_v54 = vsel %vm794_vm12, %v787_v47, %v788_v30  ;;  %v3218_v36 = vpop.f32.mrf.mxu3  ;;  %v708_v51 = vrot.slane %v3178_v35, 2 }
 0x1f5   :  { %2045 = vmatpush.msra.mxu2 %v1440_v19  ;;  %v719_v31 = vsel %vm713_vm1, %v706_v25, %v707_v37  ;;  %2046 = vmatpush.msrb.mxu3 %v1440_v19  ;;  %3817 = vst [vmem:[#allocation13_spill] sm:$0xff] %v3218_v36  ;;  %v658_v25 = vsel %vm632_vm13, %v603_v26, %v604_v41  ;;  %v605_v26 = vrot.slane %v2848_v2, 1 }
 0x1f6   :  { %1468 = vmatpush.msra.mxu1 %v1439_v23  ;;  %v2260_v47 = vpack.i.bf16 %v719_v31, %v739_v60  ;;  %v718_v31 = vsel %vm713_vm1, %v707_v37, %v708_v51  ;;  %v738_v60 = vsel %vm713_vm1, %v687_v52, %v688_v34  ;;  %v606_v52 = vrot.slane %v2850_v4, 1 }
 0x1f7   :  { %2047 = vmatpush.msra.mxu2 %v1439_v23  ;;  %2048 = vmatpush.msrb.mxu3 %v1439_v23 }
 0x1f8   :  { %1469 = vmatpush.msra.mxu1 %v1438_v57 }
 0x1f9   :  { %2049 = vmatpush.msra.mxu2 %v1438_v57  ;;  %2050 = vmatpush.msrb.mxu3 %v1438_v57 }
 0x1fb   :  { %2251 = vrot.lane.b32.xlu0 %v2250_v42, %s2382_s0  ;;  %2246 = vrot.lane.b32.xlu2 %v2245_v46, %s2383_s15  ;;  %v820_v42 = vsel %vm794_vm12, %v767_v38, %v768_v43  ;;  %v769_v38 = vrot.slane %v2848_v2, 3 }
 0x1fc   :  { %2241 = vrot.lane.b32.xlu1 %v2240_v49, %s2384_s16  ;;  %v638_v49 = vsel %vm632_vm13, %v623_v24, %v624_v32  ;;  %v2265_v46 = vpack.i.bf16 %v800_v54, %v820_v42  ;;  %v789_v24 = vrot.slane %v3178_v35, 3 }
 0x1fd   :  { %v3210_v18 = vpop.permute.xlu2 %2081  ;;  %v2255_v19 = vpack.i.bf16 %v638_v49, %v658_v25  ;;  %v637_v49 = vsel %vm632_vm13, %v624_v32, %v625_v22  ;;  %v819_v42 = vsel %vm794_vm12, %v768_v43, %v769_v38  ;;  %v709_v25 = vrot.slane %v3218_v36, 2 }
 0x1fe   :  { %v799_v54 = vsel %vm794_vm12, %v788_v30, %v789_v24  ;;  %v790_v30 = vrot.slane %v3218_v36, 3  ;;  %v689_v32 = vrot.slane %v2850_v4, 2  ;;  %v626_v43 = vrot.slane %v3218_v36, 1 }
 0x1ff   :  { %v2280_v57 = vpack.i.bf16 %v799_v54, %v819_v42  ;;  %v717_v42 = vsel %vm713_vm1, %v708_v51, %v709_v25  ;;  %v607_v51 = vrot.slane %v2852_v5, 1  ;;  %v690_v4 = vrot.slane %v2852_v5, 2 }
 0x203   :  { %2266 = vrot.lane.b32.xlu0 %v2265_v46, %s2382_s0  ;;  %2261 = vrot.lane.b32.xlu2 %v2260_v47, %s2383_s15  ;;  %v2275_v46 = vpack.i.bf16 %v718_v31, %v738_v60  ;;  %v657_v47 = vsel %vm632_vm13, %v604_v41, %v605_v26  ;;  %v3260_v41 = vpop.permute.xlu0 %2071  ;;  %v3264_v31 = vpop.permute.xlu1 %2061  ;;  %v818_v60 = vsel %vm794_vm12, %v769_v38, %v770_v17 }
 0x204   :  { %2256 = vrot.lane.b32.xlu1 %v2255_v19, %s2384_s16  ;;  %v3251_v19 = vpop.f32.mrf.mxu3  ;;  %v2270_v37 = vpack.i.bf16 %v637_v49, %v657_v47  ;;  %v798_v49 = vsel %vm794_vm12, %v789_v24, %v790_v30  ;;  %v771_v47 = vrot.slane %v2852_v5, 3  ;;  %v656_v24 = vsel %vm632_vm13, %v605_v26, %v606_v52 }
 0x205   :  { %v3235_v23 = vpop.permute.xlu2 %2101  ;;  %3818 = vst [vmem:[#allocation14_spill] sm:$0xff] %v3251_v19  ;;  %v791_v36 = vrot.slane %v3251_v19, 3  ;;  %v2295_v38 = vpack.i.bf16 %v798_v49, %v818_v60 }
 0x206   :  { %v817_v33 = vsel %vm794_vm12, %v770_v17, %v771_v47 }
 0x207   :  { %v797_v26 = vsel %vm794_vm12, %v790_v30, %v791_v36 }
 0x20b   :  { %2281 = vrot.lane.b32.xlu0 %v2280_v57, %s2382_s0  ;;  %2276 = vrot.lane.b32.xlu2 %v2275_v46, %s2383_s15  ;;  %v737_v57 = vsel %vm713_vm1, %v688_v34, %v689_v32  ;;  %v636_v46 = vsel %vm632_vm13, %v625_v22, %v626_v43  ;;  %v627_v34 = vrot.slane %v3251_v19, 1 }
 0x20c   :  { %2271 = vrot.lane.b32.xlu1 %v2270_v37, %s2384_s16  ;;  %v710_v37 = vrot.slane %v3251_v19, 2  ;;  %v2290_v35 = vpack.i.bf16 %v717_v42, %v737_v57  ;;  %v2285_v2 = vpack.i.bf16 %v636_v46, %v656_v24  ;;  %v3286_v22 = vpop.f32.mrf.mxu3  ;;  %v736_v46 = vsel %vm713_vm1, %v689_v32, %v690_v4 }
 0x20d   :  { %v3262_v54 = vpop.permute.xlu2 %2106  ;;  %v635_v17 = vsel %vm632_vm13, %v626_v43, %v627_v34  ;;  %v2310_v42 = vpack.i.bf16 %v797_v26, %v817_v33  ;;  %v711_v19 = vrot.slane %v3286_v22, 2  ;;  %v792_v5 = vrot.slane %v3286_v22, 3 }
 0x20e   :  { %v716_v49 = vsel %vm713_vm1, %v709_v25, %v710_v37  ;;  %v2084_v32 = vunpack.i.h.bf16 %v3210_v18 }
 0x20f   :  { %v2305_v60 = vpack.i.bf16 %v716_v49, %v736_v46  ;;  %v628_v49 = vrot.slane %v3286_v22, 1 }
 0x213   :  { %2296 = vrot.lane.b32.xlu0 %v2295_v38, %s2382_s0  ;;  %2291 = vrot.lane.b32.xlu2 %v2290_v35, %s2383_s15 }
 0x214   :  { %2286 = vrot.lane.b32.xlu1 %v2285_v2, %s2384_s16  ;;  %v655_v2 = vsel %vm632_vm13, %v606_v52, %v607_v51  ;;  %v2083_v52 = vunpack.i.l.bf16 %v3210_v18 }
 0x215   :  { %v3297_v57 = vpop.permute.xlu2 %2126  ;;  %v2087_v35 = vpop.permute.xlu0 %2086  ;;  %v2300_v0 = vpack.i.bf16 %v635_v17, %v655_v2  ;;  %v796_v2 = vsel %vm794_vm12, %v791_v36, %v792_v5 }
 0x216   :  { %v2077_v24 = vpop.permute.xlu1 %2076  ;;  %v2089_v1 = vunpack.i.h.bf16 %v2087_v35  ;;  %v2088_v30 = vunpack.i.l.bf16 %v2087_v35 }
 0x217   :  { %v2079_v25 = vunpack.i.h.bf16 %v2077_v24  ;;  %v2078_v38 = vunpack.i.l.bf16 %v2077_v24  ;;  %v3820_v24 = vrot.slane %v2854_v6, 2 }
 0x219   :  { %v1316_v12 = vsel %vm1315_vm14, %v2686_v44, %v2078_v38  ;;  %v1336_v43 = vsel %vm1315_vm14, %v2860_v11, %v2079_v25  ;;  %v735_v17 = vsel %vm713_vm1, %v690_v4, %v3820_v24  ;;  %v3821_v25 = vrot.slane %v2854_v6, 1  ;;  %v3344_v38 = vpop.f32.mrf.mxu3 }
 0x21a   :  { %v1357_v33 = vsel %vm1356_vm15, %v1316_v12, %v2083_v52  ;;  %v1377_v26 = vsel %vm1356_vm15, %v1336_v43, %v2084_v32  ;;  %v634_v43 = vsel %vm632_vm13, %v627_v34, %v628_v49 }
 0x21b   :  { %2311 = vrot.lane.b32.xlu0 %v2310_v42, %s2382_s0  ;;  %2306 = vrot.lane.b32.xlu2 %v2305_v60, %s2383_s15  ;;  %v1398_v18 = vsel %vm1397_vm0, %v1357_v33, %v2088_v30  ;;  %v1418_v35 = vsel %vm1397_vm0, %v1377_v26, %v2089_v1  ;;  %v715_v42 = vsel %vm713_vm1, %v710_v37, %v711_v19  ;;  %v2064_v60 = vunpack.i.h.bf16 %v3264_v31 }
 0x21c   :  { %2301 = vrot.lane.b32.xlu1 %v2300_v0, %s2384_s16  ;;  %1470 = vmatmul.f32.vlgmr.msra.gmra.mxu1 %v1398_v18  ;;  %v3819_v1 = vrot.slane %v2854_v6, 3  ;;  %v654_v36 = vsel %vm632_vm13, %v607_v51, %v3821_v25  ;;  %v2063_v37 = vunpack.i.l.bf16 %v3264_v31  ;;  %v2103_v33 = vunpack.i.l.bf16 %v3235_v23 }
 0x21d   :  { %1530 = vmatmul.f32.vlgmr.msra.gmra.mxu2 %v1418_v35  ;;  %v3322_v46 = vpop.permute.xlu2 %2141  ;;  %v2112_v12 = vpop.permute.xlu0 %2111  ;;  %v2320_v4 = vpack.i.bf16 %v715_v42, %v735_v17  ;;  %v629_v25 = vrot.slane %v3344_v38, 1  ;;  %v2068_v17 = vunpack.i.l.bf16 %v3173_v58 }
 0x21e   :  { %v2092_v30 = vpop.permute.xlu1 %2091  ;;  %v816_v0 = vsel %vm794_vm12, %v771_v47, %v3819_v1  ;;  %v2104_v47 = vunpack.i.h.bf16 %v3235_v23  ;;  %v2114_v18 = vunpack.i.h.bf16 %v2112_v12  ;;  %v2113_v35 = vunpack.i.l.bf16 %v2112_v12 }
 0x21f   :  { %v2094_v32 = vunpack.i.h.bf16 %v2092_v30  ;;  %v2093_v52 = vunpack.i.l.bf16 %v2092_v30  ;;  %v2325_v26 = vpack.i.bf16 %v796_v2, %v816_v0  ;;  %v712_v1 = vrot.slane %v3344_v38, 2 }
 0x220   :  { %v2315_v30 = vpack.i.bf16 %v634_v43, %v654_v36  ;;  %v609_v12 = vrot.slane %v2856_v8, 1  ;;  %v1318_v0 = vsel %vm1315_vm14, %v2704_v55, %v2063_v37  ;;  %v2069_v43 = vunpack.i.h.bf16 %v3173_v58 }
 0x221   :  { %v1317_v51 = vsel %vm1315_vm14, %v2695_v48, %v2093_v52  ;;  %v1337_v31 = vsel %vm1315_vm14, %v2872_v29, %v2094_v32  ;;  %v692_v29 = vrot.slane %v2856_v8, 2  ;;  %v714_v32 = vsel %vm713_vm1, %v711_v19, %v712_v1 }
 0x222   :  { %v1358_v24 = vsel %vm1356_vm15, %v1317_v51, %v2103_v33  ;;  %v1378_v34 = vsel %vm1356_vm15, %v1337_v31, %v2104_v47  ;;  %v1338_v52 = vsel %vm1315_vm14, %v2747_v13, %v2064_v60  ;;  %v633_v47 = vsel %vm632_vm13, %v628_v49, %v629_v25 }
 0x223   :  { %2326 = vrot.lane.b32.xlu0 %v2325_v26, %s2382_s0  ;;  %2321 = vrot.lane.b32.xlu2 %v2320_v4, %s2383_s15  ;;  %v1399_v23 = vsel %vm1397_vm0, %v1358_v24, %v2113_v35  ;;  %v1419_v48 = vsel %vm1397_vm0, %v1378_v34, %v2114_v18  ;;  %v2074_v33 = vunpack.i.h.bf16 %v3260_v41  ;;  %v3822_v55 = vrot.slane %v2854_v6, 2 }
 0x224   :  { %2316 = vrot.lane.b32.xlu1 %v2315_v30, %s2384_s16  ;;  %1473 = vmatmul.f32.gmra.mxu1 %v1399_v23  ;;  %v3823_v19 = vrot.slane %v2854_v6, 1  ;;  %v1359_v58 = vsel %vm1356_vm15, %v1318_v0, %v2068_v17  ;;  %v2073_v49 = vunpack.i.l.bf16 %v3260_v41  ;;  %v1379_v4 = vsel %vm1356_vm15, %v1338_v52, %v2069_v43 }
 0x225   :  { %1533 = vmatmul.f32.gmra.mxu2 %v1419_v48  ;;  %v3365_v2 = vpop.permute.xlu2 %2156  ;;  %v2117_v42 = vpop.permute.xlu0 %2116  ;;  %v734_v37 = vsel %vm713_vm1, %v3822_v55, %v692_v29  ;;  %v793_v18 = vrot.slane %v3344_v38, 3  ;;  %v3824_v51 = vrot.slane %v2686_v44, 1  ;;  %v773_v41 = vrot.slane %v2856_v8, 3 }
 0x226   :  { %v2097_v36 = vpop.permute.xlu1 %2096  ;;  %v653_v13 = vsel %vm632_vm13, %v3823_v19, %v609_v12  ;;  %v2335_v26 = vpack.i.bf16 %v714_v32, %v734_v37  ;;  %v1400_v24 = vsel %vm1397_vm0, %v1359_v58, %v2073_v49  ;;  %v1420_v34 = vsel %vm1397_vm0, %v1379_v4, %v2074_v33 }
 0x227   :  { %v2098_v60 = vunpack.i.l.bf16 %v2097_v36  ;;  %v2099_v35 = vunpack.i.h.bf16 %v2097_v36  ;;  %v672_v31 = vsel %vm632_vm13, %v629_v25, %v3824_v51  ;;  %v2330_v30 = vpack.i.bf16 %v633_v47, %v653_v13 }
 0x228   :  { %v2108_v0 = vunpack.i.l.bf16 %v3262_v54  ;;  %v795_v36 = vsel %vm794_vm12, %v792_v5, %v793_v18  ;;  %v2109_v52 = vunpack.i.h.bf16 %v3262_v54  ;;  %v3825_v43 = vrot.slane %v2854_v6, 3 }
 0x229   :  { %v1319_v25 = vsel %vm1315_vm14, %v2713_v59, %v2098_v60  ;;  %v1339_v32 = vsel %vm1315_vm14, %v2762_v50, %v2099_v35  ;;  %v2118_v33 = vunpack.i.l.bf16 %v2117_v42  ;;  %v2119_v13 = vunpack.i.h.bf16 %v2117_v42 }
 0x22a   :  { %v815_v47 = vsel %vm794_vm12, %v3825_v43, %v773_v41  ;;  %v1360_v59 = vsel %vm1356_vm15, %v1319_v25, %v2108_v0  ;;  %v1380_v19 = vsel %vm1356_vm15, %v1339_v32, %v2109_v52  ;;  %v3826_v5 = vrot.slane %v2686_v44, 3 }
 0x22b   :  { %2336 = vrot.lane.b32.xlu0 %v2335_v26, %s2383_s15  ;;  %953 = vrot.lane.b32.xlu2 %v672_v31, %s2384_s16  ;;  %v2340_v37 = vpack.i.bf16 %v795_v36, %v815_v47  ;;  %v3827_v54 = vrot.slane %v2686_v44, 2  ;;  %v1401_v60 = vsel %vm1397_vm0, %v1360_v59, %v2118_v33  ;;  %v1421_v42 = vsel %vm1397_vm0, %v1380_v19, %v2119_v13 }
 0x22c   :  { %2331 = vrot.lane.b32.xlu1 %v2330_v30, %s2384_s16  ;;  %1476 = vmatmul.f32.gmra.mxu1 %v1400_v24  ;;  %v834_v50 = vsel %vm794_vm12, %v793_v18, %v3826_v5  ;;  %v2128_v18 = vunpack.i.l.bf16 %v3297_v57  ;;  %v3829_v36 = vrot.slane %v2860_v11, 2  ;;  %v2143_v43 = vunpack.i.l.bf16 %v3322_v46 }
 0x22d   :  { %1536 = vmatmul.f32.gmra.mxu2 %v1420_v34  ;;  %v3406_v23 = vpop.permute.xlu2 %2171  ;;  %v2132_v48 = vpop.permute.xlu0 %2131  ;;  %v753_v49 = vsel %vm713_vm1, %v712_v1, %v3827_v54  ;;  %v2129_v1 = vunpack.i.h.bf16 %v3297_v57  ;;  %v3830_v57 = vrot.slane %v2860_v11, 1 }
 0x22e   :  { %v2122_v17 = vpop.permute.xlu1 %2121  ;;  %v2133_v30 = vunpack.i.l.bf16 %v2132_v48  ;;  %v2134_v25 = vunpack.i.h.bf16 %v2132_v48 }
 0x22f   :  { %v2123_v55 = vunpack.i.l.bf16 %v2122_v17  ;;  %v2124_v58 = vunpack.i.h.bf16 %v2122_v17  ;;  %v652_v48 = vsel %vm632_vm13, %v609_v12, %v3830_v57  ;;  %v2144_v12 = vunpack.i.h.bf16 %v3322_v46 }
 0x230   :  { %v2158_v46 = vunpack.i.l.bf16 %v3365_v2 }
 0x231   :  { %v1320_v4 = vsel %vm1315_vm14, %v2722_v63, %v2123_v55  ;;  %v1340_v35 = vsel %vm1315_vm14, %v2806_v40, %v2124_v58  ;;  %v3828_v63 = vrot.slane %v2860_v11, 3  ;;  %v733_v40 = vsel %vm713_vm1, %v692_v29, %v3829_v36 }
 0x232   :  { %v1361_v31 = vsel %vm1356_vm15, %v1320_v4, %v2128_v18  ;;  %v1381_v34 = vsel %vm1356_vm15, %v1340_v35, %v2129_v1 }
 0x233   :  { %1273 = vrot.lane.b32.xlu0 %v834_v50, %s2382_s0  ;;  %2341 = vrot.lane.b32.xlu2 %v2340_v37, %s2382_s0  ;;  %v814_v17 = vsel %vm794_vm12, %v773_v41, %v3828_v63  ;;  %v1402_v41 = vsel %vm1397_vm0, %v1361_v31, %v2133_v30  ;;  %v1422_v32 = vsel %vm1397_vm0, %v1381_v34, %v2134_v25  ;;  %v2174_v25 = vunpack.i.h.bf16 %v3406_v23 }
 0x234   :  { %1113 = vrot.lane.b32.xlu1 %v753_v49, %s2383_s15  ;;  %1479 = vmatmul.f32.gmra.mxu1 %v1401_v60  ;;  %v2159_v60 = vunpack.i.h.bf16 %v3365_v2  ;;  %v2173_v2 = vunpack.i.l.bf16 %v3406_v23 }
 0x235   :  { %1539 = vmatmul.f32.gmra.mxu2 %v1421_v42  ;;  %v2147_v26 = vpop.permute.xlu0 %2146  ;;  %v3445_v51 = vpop.permute.xlu2 %2186 }
 0x236   :  { %v2137_v44 = vpop.permute.xlu1 %2136  ;;  %v2148_v33 = vunpack.i.l.bf16 %v2147_v26  ;;  %v2149_v13 = vunpack.i.h.bf16 %v2147_v26  ;;  %v2188_v23 = vunpack.i.l.bf16 %v3445_v51 }
 0x237   :  { %v2138_v24 = vunpack.i.l.bf16 %v2137_v44  ;;  %v2139_v0 = vunpack.i.h.bf16 %v2137_v44 }
 0x239   :  { %v1321_v52 = vsel %vm1315_vm14, %v2731_v3, %v2138_v24  ;;  %v1341_v47 = vsel %vm1315_vm14, %v2858_v9, %v2139_v0 }
 0x23a   :  { %v1362_v59 = vsel %vm1356_vm15, %v1321_v52, %v2143_v43  ;;  %v1382_v19 = vsel %vm1356_vm15, %v1341_v47, %v2144_v12  ;;  %v2189_v43 = vunpack.i.h.bf16 %v3445_v51 }
 0x23b   :  { %1233 = vrot.lane.b32.xlu0 %v814_v17, %s2382_s0  ;;  %1073 = vrot.lane.b32.xlu2 %v733_v40, %s2383_s15  ;;  %v1403_v3 = vsel %vm1397_vm0, %v1362_v59, %v2148_v33  ;;  %v1423_v5 = vsel %vm1397_vm0, %v1382_v19, %v2149_v13 }
 0x23c   :  { %913 = vrot.lane.b32.xlu1 %v652_v48, %s2384_s16  ;;  %1482 = vmatmul.f32.gmra.mxu1 %v1402_v41 }
 0x23d   :  { %1542 = vmatmul.f32.gmra.mxu2 %v1422_v32  ;;  %v2162_v29 = vpop.permute.xlu0 %2161  ;;  %v3477_v37 = vpop.permute.xlu2 %2201 }
 0x23e   :  { %v2152_v11 = vpop.permute.xlu1 %2151  ;;  %v2163_v26 = vunpack.i.l.bf16 %v2162_v29  ;;  %v2164_v44 = vunpack.i.h.bf16 %v2162_v29  ;;  %v2203_v51 = vunpack.i.l.bf16 %v3477_v37 }
 0x23f   :  { %v2153_v55 = vunpack.i.l.bf16 %v2152_v11  ;;  %v2154_v58 = vunpack.i.h.bf16 %v2152_v11 }
 0x241   :  { %v1322_v9 = vsel %vm1315_vm14, %v2738_v7, %v2153_v55  ;;  %v1342_v49 = vsel %vm1315_vm14, %v2866_v21, %v2154_v58 }
 0x242   :  { %v1363_v42 = vsel %vm1356_vm15, %v1322_v9, %v2158_v46  ;;  %v1383_v18 = vsel %vm1356_vm15, %v1342_v49, %v2159_v60 }
 0x243   :  { %v1404_v7 = vsel %vm1397_vm0, %v1363_v42, %v2163_v26  ;;  %v1424_v31 = vsel %vm1397_vm0, %v1383_v18, %v2164_v44 }
 0x244   :  { %1485 = vmatmul.f32.gmra.mxu1 %v1403_v3 }
 0x245   :  { %1545 = vmatmul.f32.gmra.mxu2 %v1423_v5  ;;  %v2177_v50 = vpop.permute.xlu0 %2176  ;;  %v3490_v1 = vpop.permute.xlu2 %2216  ;;  %v2204_v5 = vunpack.i.h.bf16 %v3477_v37 }
 0x246   :  { %v2167_v54 = vpop.permute.xlu1 %2166  ;;  %v2178_v63 = vunpack.i.l.bf16 %v2177_v50  ;;  %v2179_v40 = vunpack.i.h.bf16 %v2177_v50  ;;  %v2218_v37 = vunpack.i.l.bf16 %v3490_v1 }
 0x247   :  { %v2168_v4 = vunpack.i.l.bf16 %v2167_v54  ;;  %v2169_v35 = vunpack.i.h.bf16 %v2167_v54 }
 0x249   :  { %v1323_v21 = vsel %vm1315_vm14, %v2743_v10, %v2168_v4  ;;  %v1343_v34 = vsel %vm1315_vm14, %v2905_v28, %v2169_v35  ;;  %v2219_v35 = vunpack.i.h.bf16 %v3490_v1 }
 0x24a   :  { %v1364_v0 = vsel %vm1356_vm15, %v1323_v21, %v2173_v2  ;;  %v1384_v36 = vsel %vm1356_vm15, %v1343_v34, %v2174_v25 }
 0x24b   :  { %v1405_v48 = vsel %vm1397_vm0, %v1364_v0, %v2178_v63  ;;  %v1425_v10 = vsel %vm1397_vm0, %v1384_v36, %v2179_v40 }
 0x24c   :  { %1488 = vmatmul.f32.gmra.mxu1 %v1404_v7 }
 0x24d   :  { %1548 = vmatmul.f32.gmra.mxu2 %v1424_v31  ;;  %v2192_v30 = vpop.permute.xlu0 %2191  ;;  %v3504_v41 = vpop.permute.xlu2 %2231 }
 0x24e   :  { %v2182_v24 = vpop.permute.xlu1 %2181  ;;  %v2193_v47 = vunpack.i.l.bf16 %v2192_v30  ;;  %v2194_v33 = vunpack.i.h.bf16 %v2192_v30  ;;  %v2233_v1 = vunpack.i.l.bf16 %v3504_v41  ;;  %v2234_v36 = vunpack.i.h.bf16 %v3504_v41 }
 0x24f   :  { %v2183_v17 = vunpack.i.l.bf16 %v2182_v24  ;;  %v2184_v57 = vunpack.i.h.bf16 %v2182_v24 }
 0x251   :  { %v1324_v28 = vsel %vm1315_vm14, %v2750_v14, %v2183_v17  ;;  %v1344_v52 = vsel %vm1315_vm14, %v2934_v20, %v2184_v57 }
 0x252   :  { %v1365_v11 = vsel %vm1356_vm15, %v1324_v28, %v2188_v23  ;;  %v1385_v59 = vsel %vm1356_vm15, %v1344_v52, %v2189_v43 }
 0x253   :  { %v1406_v19 = vsel %vm1397_vm0, %v1365_v11, %v2193_v47  ;;  %v1426_v14 = vsel %vm1397_vm0, %v1385_v59, %v2194_v33 }
 0x254   :  { %1491 = vmatmul.f32.gmra.mxu1 %v1405_v48 }
 0x255   :  { %1551 = vmatmul.f32.gmra.mxu2 %v1425_v10  ;;  %v2207_v32 = vpop.permute.xlu0 %2206  ;;  %v2247_v50 = vpop.permute.xlu2 %2246 }
 0x256   :  { %v2197_v29 = vpop.permute.xlu1 %2196  ;;  %v2208_v46 = vunpack.i.l.bf16 %v2207_v32  ;;  %v2209_v60 = vunpack.i.h.bf16 %v2207_v32  ;;  %v2248_v41 = vunpack.i.l.bf16 %v2247_v50  ;;  %v2249_v47 = vunpack.i.h.bf16 %v2247_v50  ;;  %v3832_v50 = vld [vmem:[#allocation10_spill] sm:$0xff] }
 0x257   :  { %v2198_v12 = vunpack.i.l.bf16 %v2197_v29  ;;  %v2199_v55 = vunpack.i.h.bf16 %v2197_v29 }
 0x259   :  { %v1325_v20 = vsel %vm1315_vm14, %v2772_v27, %v2198_v12  ;;  %v1345_v3 = vsel %vm1315_vm14, %v2971_v53, %v2199_v55 }
 0x25a   :  { %v1366_v9 = vsel %vm1356_vm15, %v1325_v20, %v2203_v51  ;;  %v1386_v49 = vsel %vm1356_vm15, %v1345_v3, %v2204_v5 }
 0x25b   :  { %v1407_v26 = vsel %vm1397_vm0, %v1366_v9, %v2208_v46  ;;  %v1427_v27 = vsel %vm1397_vm0, %v1386_v49, %v2209_v60 }
 0x25c   :  { %1494 = vmatmul.f32.gmra.mxu1 %v1406_v19 }
 0x25d   :  { %1554 = vmatmul.f32.gmra.mxu2 %v1426_v14  ;;  %v2222_v13 = vpop.permute.xlu0 %2221  ;;  %v2262_v31 = vpop.permute.xlu2 %2261 }
 0x25e   :  { %v2212_v58 = vpop.permute.xlu1 %2211  ;;  %v2223_v30 = vunpack.i.l.bf16 %v2222_v13  ;;  %v2224_v24 = vunpack.i.h.bf16 %v2222_v13  ;;  %v2263_v3 = vunpack.i.l.bf16 %v2262_v31  ;;  %v2264_v46 = vunpack.i.h.bf16 %v2262_v31  ;;  %v3834_v31 = vld [vmem:[#allocation11_spill] sm:$0xff] }
 0x25f   :  { %v2213_v54 = vunpack.i.l.bf16 %v2212_v58  ;;  %v2214_v42 = vunpack.i.h.bf16 %v2212_v58  ;;  %v3831_v58 = vld [vmem:[#allocation5_spill] sm:$0xff] }
 0x261   :  { %v1326_v53 = vsel %vm1315_vm14, %v2811_v45, %v2213_v54  ;;  %v1346_v44 = vsel %vm1315_vm14, %v2999_v15, %v2214_v42 }
 0x262   :  { %v1367_v7 = vsel %vm1356_vm15, %v1326_v53, %v2218_v37  ;;  %v1387_v2 = vsel %vm1356_vm15, %v1346_v44, %v2219_v35 }
 0x263   :  { %v1408_v25 = vsel %vm1397_vm0, %v1367_v7, %v2223_v30  ;;  %v1428_v45 = vsel %vm1397_vm0, %v1387_v2, %v2224_v24 }
 0x264   :  { %1497 = vmatmul.f32.gmra.mxu1 %v1407_v26 }
 0x265   :  { %1557 = vmatmul.f32.gmra.mxu2 %v1427_v27  ;;  %v2237_v4 = vpop.permute.xlu0 %2236  ;;  %v2277_v23 = vpop.permute.xlu2 %2276 }
 0x266   :  { %v2227_v18 = vpop.permute.xlu1 %2226  ;;  %v2238_v57 = vunpack.i.l.bf16 %v2237_v4  ;;  %v2239_v32 = vunpack.i.h.bf16 %v2237_v4  ;;  %v2278_v35 = vunpack.i.l.bf16 %v2277_v23 }
 0x267   :  { %v2228_v21 = vunpack.i.l.bf16 %v2227_v18  ;;  %v2229_v34 = vunpack.i.h.bf16 %v2227_v18  ;;  %v3833_v18 = vld [vmem:[#allocation6_spill] sm:$0xff] }
 0x269   :  { %v1327_v15 = vsel %vm1315_vm14, %v2840_v61, %v2228_v21  ;;  %v1347_v17 = vsel %vm1315_vm14, %v3024_v39, %v2229_v34  ;;  %v2279_v21 = vunpack.i.h.bf16 %v2277_v23 }
 0x26a   :  { %v1368_v40 = vsel %vm1356_vm15, %v1327_v15, %v2233_v1  ;;  %v1388_v10 = vsel %vm1356_vm15, %v1347_v17, %v2234_v36  ;;  %v3835_v36 = vld [vmem:[#allocation7_spill] sm:$0xff] }
 0x26b   :  { %v1409_v29 = vsel %vm1397_vm0, %v1368_v40, %v2238_v57  ;;  %v1429_v61 = vsel %vm1397_vm0, %v1388_v10, %v2239_v32  ;;  %v3836_v10 = vld [vmem:[#allocation12_spill] sm:$0xff] }
 0x26c   :  { %1500 = vmatmul.f32.gmra.mxu1 %v1408_v25 }
 0x26d   :  { %1560 = vmatmul.f32.gmra.mxu2 %v1428_v45  ;;  %v2252_v0 = vpop.permute.xlu0 %2251 }
 0x26e   :  { %v2242_v63 = vpop.permute.xlu1 %2241  ;;  %v2253_v59 = vunpack.i.l.bf16 %v2252_v0  ;;  %v2254_v19 = vunpack.i.h.bf16 %v2252_v0 }
 0x26f   :  { %v2243_v48 = vunpack.i.l.bf16 %v2242_v63  ;;  %v2244_v28 = vunpack.i.h.bf16 %v2242_v63 }
 0x271   :  { %v1328_v39 = vsel %vm1315_vm14, %v2842_v62, %v2243_v48  ;;  %v1348_v11 = vsel %vm1315_vm14, %v3053_v56, %v2244_v28  ;;  %v2292_v62 = vpop.permute.xlu2 %2291 }
 0x272   :  { %v1369_v12 = vsel %vm1356_vm15, %v1328_v39, %v2248_v41  ;;  %v1389_v55 = vsel %vm1356_vm15, %v1348_v11, %v2249_v47  ;;  %v2293_v57 = vunpack.i.l.bf16 %v2292_v62  ;;  %v2294_v28 = vunpack.i.h.bf16 %v2292_v62 }
 0x273   :  { %v1410_v13 = vsel %vm1397_vm0, %v1369_v12, %v2253_v59  ;;  %v1430_v20 = vsel %vm1397_vm0, %v1389_v55, %v2254_v19  ;;  %v1813_v12 = vld [vmem:[%s3786_s5 + $0x10] sm:$0xff] }
 0x274   :  { %1503 = vmatmul.f32.gmra.mxu1 %v1409_v29  ;;  %1838 = vmatpush.msrb.mxu2 %v1813_v12 }
 0x275   :  { %1563 = vmatmul.f32.gmra.mxu2 %v1429_v61  ;;  %v2267_v52 = vpop.permute.xlu0 %2266 }
 0x276   :  { %v2257_v43 = vpop.permute.xlu1 %2256  ;;  %v2268_v49 = vunpack.i.l.bf16 %v2267_v52  ;;  %v2269_v26 = vunpack.i.h.bf16 %v2267_v52 }
 0x277   :  { %v2258_v33 = vunpack.i.l.bf16 %v2257_v43  ;;  %v2259_v14 = vunpack.i.h.bf16 %v2257_v43 }
 0x279   :  { %v1329_v56 = vsel %vm1315_vm14, %v3831_v58, %v2258_v33  ;;  %v1349_v9 = vsel %vm1315_vm14, %v3832_v50, %v2259_v14  ;;  %v2307_v2 = vpop.permute.xlu2 %2306  ;;  %v3837_v33 = vld [vmem:[#allocation8_spill] sm:$0xff] }
 0x27a   :  { %v1370_v54 = vsel %vm1356_vm15, %v1329_v56, %v2263_v3  ;;  %v1390_v42 = vsel %vm1356_vm15, %v1349_v9, %v2264_v46  ;;  %v2308_v19 = vunpack.i.l.bf16 %v2307_v2  ;;  %v2309_v62 = vunpack.i.h.bf16 %v2307_v2 }
 0x27b   :  { %v1411_v4 = vsel %vm1397_vm0, %v1370_v54, %v2268_v49  ;;  %v1431_v53 = vsel %vm1397_vm0, %v1390_v42, %v2269_v26  ;;  %v3839_v42 = vld [vmem:[#allocation9_spill] sm:$0xff] }
 0x27c   :  { %1506 = vmatmul.f32.gmra.mxu1 %v1410_v13  ;;  %v3838_v13 = vld [vmem:[#allocation13_spill] sm:$0xff] }
 0x27d   :  { %1566 = vmatmul.f32.gmra.mxu2 %v1430_v20  ;;  %v2282_v51 = vpop.permute.xlu0 %2281 }
 0x27e   :  { %v2272_v5 = vpop.permute.xlu1 %2271  ;;  %v2283_v34 = vunpack.i.l.bf16 %v2282_v51  ;;  %v2284_v0 = vunpack.i.h.bf16 %v2282_v51 }
 0x27f   :  { %v2273_v60 = vunpack.i.l.bf16 %v2272_v5  ;;  %v2274_v27 = vunpack.i.h.bf16 %v2272_v5 }
 0x281   :  { %v1330_v44 = vsel %vm1315_vm14, %v3833_v18, %v2273_v60  ;;  %v1350_v30 = vsel %vm1315_vm14, %v3834_v31, %v2274_v27  ;;  %v2322_v29 = vpop.permute.xlu2 %2321  ;;  %v3597_v31 = vld [vmem:[%s3785_s4] ss:$0 sm:$0xff] }
 0x282   :  { %v1371_v24 = vsel %vm1356_vm15, %v1330_v44, %v2278_v35  ;;  %v1391_v45 = vsel %vm1356_vm15, %v1350_v30, %v2279_v21  ;;  %v2323_v27 = vunpack.i.l.bf16 %v2322_v29  ;;  %v2324_v18 = vunpack.i.h.bf16 %v2322_v29 }
 0x283   :  { %v1412_v1 = vsel %vm1397_vm0, %v1371_v24, %v2283_v34  ;;  %v1432_v63 = vsel %vm1397_vm0, %v1391_v45, %v2284_v0  ;;  %v1592_v45 = vadd.s32 16, %v2754_v16  ;;  %vm1612_vm2 = vcmp.le.s32.totalorder %v2754_v16, %v3597_v31 }
 0x284   :  { %1509 = vmatmul.f32.gmra.mxu1 %v1411_v4 }
 0x285   :  { %1569 = vmatmul.f32.gmra.mxu2 %v1431_v53  ;;  %v2297_v37 = vpop.permute.xlu0 %2296  ;;  %v3840_v53 = vld [vmem:[#allocation14_spill] sm:$0xff]  ;;  %vm1614_vm3 = vcmp.le.s32.totalorder %v1592_v45, %v3597_v31 }
 0x286   :  { %v2287_v7 = vpop.permute.xlu1 %2286  ;;  %v2298_v61 = vunpack.i.l.bf16 %v2297_v37  ;;  %v2299_v41 = vunpack.i.h.bf16 %v2297_v37 }
 0x287   :  { %v2288_v25 = vunpack.i.l.bf16 %v2287_v7  ;;  %v2289_v15 = vunpack.i.h.bf16 %v2287_v7 }
 0x289   :  { %v1331_v40 = vsel %vm1315_vm14, %v3835_v36, %v2288_v25  ;;  %v1351_v32 = vsel %vm1315_vm14, %v3836_v10, %v2289_v15  ;;  %v954_v46 = vpop.permute.xlu2 %953 }
 0x28a   :  { %v1372_v23 = vsel %vm1356_vm15, %v1331_v40, %v2293_v57  ;;  %v1392_v39 = vsel %vm1356_vm15, %v1351_v32, %v2294_v28  ;;  %v1355_v40 = vsel %vm1315_vm14, %v3344_v38, %v954_v46  ;;  %v1591_v38 = vadd.s32 8, %v2754_v16 }
 0x28b   :  { %v1413_v11 = vsel %vm1397_vm0, %v1372_v23, %v2298_v61  ;;  %v1433_v47 = vsel %vm1397_vm0, %v1392_v39, %v2299_v41 }
 0x28c   :  { %1512 = vmatmul.f32.gmra.mxu1 %v1412_v1  ;;  %vm1613_vm5 = vcmp.le.s32.totalorder %v1591_v38, %v3597_v31 }
 0x28d   :  { %1572 = vmatmul.f32.gmra.mxu2 %v1432_v63  ;;  %v2312_v17 = vpop.permute.xlu0 %2311 }
 0x28e   :  { %v2302_v48 = vpop.permute.xlu1 %2301  ;;  %v2313_v58 = vunpack.i.l.bf16 %v2312_v17  ;;  %v2314_v50 = vunpack.i.h.bf16 %v2312_v17 }
 0x28f   :  { %v2303_v52 = vunpack.i.l.bf16 %v2302_v48  ;;  %v2304_v43 = vunpack.i.h.bf16 %v2302_v48 }
 0x291   :  { %v1332_v55 = vsel %vm1315_vm14, %v3837_v33, %v2303_v52  ;;  %v1352_v20 = vsel %vm1315_vm14, %v3838_v13, %v2304_v43  ;;  %v2342_v1 = vpop.permute.xlu2 %2341 }
 0x292   :  { %v1373_v51 = vsel %vm1356_vm15, %v1332_v55, %v2308_v19  ;;  %v1393_v5 = vsel %vm1356_vm15, %v1352_v20, %v2309_v62  ;;  %v2343_v29 = vunpack.i.l.bf16 %v2342_v1  ;;  %v2344_v52 = vunpack.i.h.bf16 %v2342_v1 }
 0x293   :  { %v1414_v54 = vsel %vm1397_vm0, %v1373_v51, %v2313_v58  ;;  %v1434_v49 = vsel %vm1397_vm0, %v1393_v5, %v2314_v50  ;;  %v1594_v50 = vadd.s32 32, %v2754_v16 }
 0x294   :  { %1515 = vmatmul.f32.gmra.mxu1 %v1413_v11 }
 0x295   :  { %1575 = vmatmul.f32.gmra.mxu2 %v1433_v47  ;;  %v2327_v59 = vpop.permute.xlu0 %2326  ;;  %v1593_v47 = vadd.s32 24, %v2754_v16  ;;  %vm1616_vm7 = vcmp.le.s32.totalorder %v1594_v50, %v3597_v31 }
 0x296   :  { %v2317_v14 = vpop.permute.xlu1 %2316  ;;  %v2328_v7 = vunpack.i.l.bf16 %v2327_v59  ;;  %v2329_v24 = vunpack.i.h.bf16 %v2327_v59 }
 0x297   :  { %v2318_v56 = vunpack.i.l.bf16 %v2317_v14  ;;  %v2319_v9 = vunpack.i.h.bf16 %v2317_v14  ;;  %vm1615_vm6 = vcmp.le.s32.totalorder %v1593_v47, %v3597_v31 }
 0x299   :  { %v1471_v3 = vpop.f32.mrf.mxu1  ;;  %v1333_v26 = vsel %vm1315_vm14, %v3839_v42, %v2318_v56  ;;  %v1353_v37 = vsel %vm1315_vm14, %v3840_v53, %v2319_v9  ;;  %v1074_v55 = vpop.permute.xlu2 %1073 }
 0x29a   :  { %v1374_v35 = vsel %vm1356_vm15, %v1333_v26, %v2323_v27  ;;  %v1394_v2 = vsel %vm1356_vm15, %v1353_v37, %v2324_v18  ;;  %v1672_v32 = vsel %vm1612_vm2, %v1471_v3, -inf }
 0x29b   :  { %v1415_v25 = vsel %vm1397_vm0, %v1374_v35, %v2328_v7  ;;  %v1435_v15 = vsel %vm1397_vm0, %v1394_v2, %v2329_v24  ;;  %v1713_v41 = vsel %vm1712_vm4, %v1672_v32, -inf  ;;  %v1595_v7 = vadd.s32 40, %v2754_v16 }
 0x29c   :  { %1518 = vmatmul.f32.gmra.mxu1 %v1414_v54  ;;  %v1597_v32 = vadd.s32 56, %v2754_v16 }
 0x29d   :  { %1578 = vmatmul.f32.gmra.mxu2 %v1434_v49  ;;  %v2337_v60 = vpop.permute.xlu0 %2336  ;;  %vm1617_vm8 = vcmp.le.s32.totalorder %v1595_v7, %v3597_v31 }
 0x29e   :  { %v2332_v4 = vpop.permute.xlu1 %2331  ;;  %v2338_v0 = vunpack.i.l.bf16 %v2337_v60  ;;  %v2339_v63 = vunpack.i.h.bf16 %v2337_v60  ;;  %vm1619_vm10 = vcmp.le.s32.totalorder %v1597_v32, %v3597_v31  ;;  %v1605_v32 = vadd.s32 120, %v2754_v16 }
 0x29f   :  { %v2333_v30 = vunpack.i.l.bf16 %v2332_v4  ;;  %v2334_v34 = vunpack.i.h.bf16 %v2332_v4 }
 0x2a0   :  { %v1531_v44 = vpop.f32.mrf.mxu2 }
 0x2a1   :  { %v1474_v21 = vpop.f32.mrf.mxu1  ;;  %v1334_v36 = vsel %vm1315_vm14, %v2854_v6, %v2333_v30  ;;  %v1354_v48 = vsel %vm1315_vm14, %v3286_v22, %v2334_v34  ;;  %v1692_v19 = vsel %vm1612_vm2, %v1531_v44, -inf  ;;  %vm1627_vm2 = vcmp.le.s32.totalorder %v1605_v32, %v3597_v31 }
 0x2a2   :  { %v1375_v6 = vsel %vm1356_vm15, %v1334_v36, %v2338_v0  ;;  %v1395_v22 = vsel %vm1356_vm15, %v1354_v48, %v2339_v63  ;;  %v1673_v13 = vsel %vm1613_vm5, %v1474_v21, -inf  ;;  %v1758_v56 = vsel %vm1712_vm4, %v1692_v19, -inf }
 0x2a3   :  { %v1416_v11 = vsel %vm1397_vm0, %v1375_v6, %v2343_v29  ;;  %v1436_v59 = vsel %vm1397_vm0, %v1395_v22, %v2344_v52  ;;  %v1714_v9 = vsel %vm1712_vm4, %v1673_v13, -inf }
 0x2a4   :  { %1521 = vmatmul.f32.gmra.mxu1 %v1415_v25 }
 0x2a5   :  { %1581 = vmatmul.f32.gmra.mxu2 %v1435_v15  ;;  %v1274_v17 = vpop.permute.xlu0 %1273  ;;  %v1596_v15 = vadd.s32 48, %v2754_v16 }
 0x2a6   :  { %v1114_v57 = vpop.permute.xlu1 %1113 }
 0x2a7   :  { %v1396_v10 = vsel %vm1356_vm15, %v1355_v40, %v1114_v57  ;;  %vm1618_vm9 = vcmp.le.s32.totalorder %v1596_v15, %v3597_v31 }
 0x2a8   :  { %v1534_v28 = vpop.f32.mrf.mxu2  ;;  %v1437_v23 = vsel %vm1397_vm0, %v1396_v10, %v1274_v17 }
 0x2a9   :  { %v1477_v61 = vpop.f32.mrf.mxu1  ;;  %1587 = vmatmul.f32.vlgmr.msrb.gmra.mxu3 %v1437_v23  ;;  %v1693_v42 = vsel %vm1613_vm5, %v1534_v28, -inf  ;;  %v1812_v23 = vld [vmem:[%s3786_s5 + $0x8] sm:$0xff] }
 0x2aa   :  { %v1674_v39 = vsel %vm1614_vm3, %v1477_v61, -inf  ;;  %v1759_v53 = vsel %vm1712_vm4, %v1693_v42, -inf  ;;  %1839 = vmatpush.msrb.mxu2 %v1812_v23  ;;  %v1606_v23 = vadd.s32 128, %v2754_v16 }
 0x2ab   :  { %v1715_v43 = vsel %vm1712_vm4, %v1674_v39, -inf }
 0x2ac   :  { %v1716_v12 = vmax.f32 %v1713_v41, %v1715_v43  ;;  %1524 = vmatmul.f32.gmra.mxu1 %v1416_v11  ;;  %v1598_v41 = vadd.s32 64, %v2754_v16 }
 0x2ad   :  { %1584 = vmatmul.f32.gmra.mxu2 %v1436_v59  ;;  %v1234_v3 = vpop.permute.xlu0 %1233 }
 0x2ae   :  { %v914_v33 = vpop.permute.xlu1 %913  ;;  %vm1620_vm11 = vcmp.le.s32.totalorder %v1598_v41, %v3597_v31 }
 0x2af   :  { %v1335_v14 = vsel %vm1315_vm14, %v2856_v8, %v914_v33 }
 0x2b0   :  { %v1537_v20 = vpop.f32.mrf.mxu2  ;;  %v1376_v62 = vsel %vm1356_vm15, %v1335_v14, %v1074_v55  ;;  %v1599_v14 = vadd.s32 72, %v2754_v16 }
 0x2b1   :  { %v1694_v51 = vsel %vm1614_vm3, %v1537_v20, -inf  ;;  %v1480_v58 = vpop.f32.mrf.mxu1  ;;  %v1417_v49 = vsel %vm1397_vm0, %v1376_v62, %v1234_v3  ;;  %vm1628_vm3 = vcmp.le.s32.totalorder %v1606_v23, %v3597_v31 }
 0x2b2   :  { %v1760_v5 = vsel %vm1712_vm4, %v1694_v51, -inf  ;;  %v1675_v8 = vsel %vm1615_vm6, %v1480_v58, -inf  ;;  %vm1621_vm12 = vcmp.le.s32.totalorder %v1599_v14, %v3597_v31 }
 0x2b3   :  { %v1761_v46 = vmax.f32 %v1758_v56, %v1760_v5  ;;  %v1717_v54 = vsel %vm1712_vm4, %v1675_v8, -inf  ;;  %v1600_v8 = vadd.s32 80, %v2754_v16 }
 0x2b4   :  { %v1718_v60 = vmax.f32 %v1714_v9, %v1717_v54  ;;  %1527 = vmatmul.f32.gmra.mxu1 %v1417_v49 }
 0x2b5   :  { %vm1622_vm1 = vcmp.le.s32.totalorder %v1600_v8, %v3597_v31 }
 0x2b8   :  { %v1540_v26 = vpop.f32.mrf.mxu2 }
 0x2b9   :  { %v1695_v27 = vsel %vm1615_vm6, %v1540_v26, -inf  ;;  %v1483_v4 = vpop.f32.mrf.mxu1 }
 0x2ba   :  { %v1762_v37 = vsel %vm1712_vm4, %v1695_v27, -inf  ;;  %v1676_v18 = vsel %vm1616_vm7, %v1483_v4, -inf }
 0x2bb   :  { %v1763_v44 = vmax.f32 %v1759_v53, %v1762_v37  ;;  %v1719_v35 = vsel %vm1712_vm4, %v1676_v18, -inf  ;;  %v1811_v53 = vld [vmem:[%s3786_s5] sm:$0xff] }
 0x2bc   :  { %v1720_v30 = vmax.f32 %v1716_v12, %v1719_v35  ;;  %1840 = vmatpush.msrb.mxu2 %v1811_v53 }
 0x2c0   :  { %v1543_v21 = vpop.f32.mrf.mxu2 }
 0x2c1   :  { %v1696_v2 = vsel %vm1616_vm7, %v1543_v21, -inf  ;;  %v1486_v24 = vpop.f32.mrf.mxu1 }
 0x2c2   :  { %v1764_v34 = vsel %vm1712_vm4, %v1696_v2, -inf  ;;  %v1677_v25 = vsel %vm1617_vm8, %v1486_v24, -inf  ;;  %v1601_v24 = vadd.s32 88, %v2754_v16 }
 0x2c3   :  { %v1765_v45 = vmax.f32 %v1761_v46, %v1764_v34  ;;  %v1721_v0 = vsel %vm1712_vm4, %v1677_v25, -inf  ;;  %v1602_v34 = vadd.s32 96, %v2754_v16 }
 0x2c4   :  { %v1722_v1 = vmax.f32 %v1718_v60, %v1721_v0  ;;  %vm1623_vm13 = vcmp.le.s32.totalorder %v1601_v24, %v3597_v31  ;;  %v1603_v0 = vadd.s32 104, %v2754_v16 }
 0x2c5   :  { %vm1624_vm14 = vcmp.le.s32.totalorder %v1602_v34, %v3597_v31 }
 0x2c6   :  { %vm1625_vm15 = vcmp.le.s32.totalorder %v1603_v0, %v3597_v31 }
 0x2c8   :  { %v1546_v63 = vpop.f32.mrf.mxu2 }
 0x2c9   :  { %v1697_v17 = vsel %vm1617_vm8, %v1546_v63, -inf  ;;  %v1489_v36 = vpop.f32.mrf.mxu1  ;;  %vm1821_vm8 = vcmask 1041409  }
 0x2ca   :  { %v1766_v40 = vsel %vm1712_vm4, %v1697_v17, -inf  ;;  %v1678_v57 = vsel %vm1618_vm9, %v1489_v36, -inf }
 0x2cb   :  { %v3662_v48 = vmax.f32 %v1763_v44, %v1766_v40  ;;  %v1723_v10 = vsel %vm1712_vm4, %v1678_v57, -inf  ;;  %v1604_v57 = vadd.s32 112, %v2754_v16 }
 0x2cc   :  { %v1724_v28 = vmax.f32 %v1720_v30, %v1723_v10 }
 0x2cd   :  { %vm1626_vm0 = vcmp.le.s32.totalorder %v1604_v57, %v3597_v31 }
 0x2d0   :  { %v1549_v6 = vpop.f32.mrf.mxu2 }
 0x2d1   :  { %v1698_v29 = vsel %vm1618_vm9, %v1549_v6, -inf  ;;  %v1492_v38 = vpop.f32.mrf.mxu1  ;;  %vm1885_vm9 = vcmask 1043456  }
 0x2d2   :  { %v1768_v61 = vsel %vm1712_vm4, %v1698_v29, -inf  ;;  %v1679_v22 = vsel %vm1619_vm10, %v1492_v38, -inf }
 0x2d3   :  { %v1769_v52 = vmax.f32 %v1765_v45, %v1768_v61  ;;  %v1725_v39 = vsel %vm1712_vm4, %v1679_v22, -inf  ;;  %v1607_v61 = vadd.s32 136, %v2754_v16 }
 0x2d4   :  { %v1726_v43 = vmax.f32 %v1722_v1, %v1725_v39  ;;  %v1609_v39 = vadd.s32 152, %v2754_v16 }
 0x2d5   :  { %vm1629_vm5 = vcmp.le.s32.totalorder %v1607_v61, %v3597_v31 }
 0x2d6   :  { %vm1631_vm6 = vcmp.le.s32.totalorder %v1609_v39, %v3597_v31 }
 0x2d8   :  { %v1552_v11 = vpop.f32.mrf.mxu2 }
 0x2d9   :  { %v1699_v47 = vsel %vm1619_vm10, %v1552_v11, -inf  ;;  %v1495_v12 = vpop.f32.mrf.mxu1  ;;  %v1608_v11 = vadd.s32 144, %v2754_v16  ;;  %vm1851_vm10 = vcmask 64512  }
 0x2da   :  { %v1770_v59 = vsel %vm1712_vm4, %v1699_v47, -inf  ;;  %v1680_v33 = vsel %vm1620_vm11, %v1495_v12, -inf }
 0x2db   :  { %v1771_v55 = vmax.f32 %v3662_v48, %v1770_v59  ;;  %v1727_v19 = vsel %vm1712_vm4, %v1680_v33, -inf  ;;  %vm1630_vm7 = vcmp.le.s32.totalorder %v1608_v11, %v3597_v31  ;;  %v2346_v31 = vld [vmem:[%s3784_s3] ss:$0 sm:$0xff] }
 0x2dc   :  { %v3678_v13 = vmax.f32 %v1724_v28, %v1727_v19 }
 0x2e0   :  { %v1555_v20 = vpop.f32.mrf.mxu2 }
 0x2e1   :  { %v1700_v62 = vsel %vm1620_vm11, %v1555_v20, -inf  ;;  %v1498_v51 = vpop.f32.mrf.mxu1  ;;  %vm1909_vm11 = vcmask 9216  }
 0x2e2   :  { %v1772_v58 = vsel %vm1712_vm4, %v1700_v62, -inf  ;;  %v1681_v56 = vsel %vm1621_vm12, %v1498_v51, -inf }
 0x2e3   :  { %v1773_v3 = vmax.f32 %v1769_v52, %v1772_v58  ;;  %v1729_v5 = vsel %vm1712_vm4, %v1681_v56, -inf }
 0x2e4   :  { %v3686_v50 = vmax.f32 %v1726_v43, %v1729_v5 }
 0x2e8   :  { %v1558_v9 = vpop.f32.mrf.mxu2 }
 0x2e9   :  { %v1501_v46 = vpop.f32.mrf.mxu1  ;;  %v1701_v25 = vsel %vm1621_vm12, %v1558_v9, -inf }
 0x2ea   :  { %v1682_v54 = vsel %vm1622_vm1, %v1501_v46, -inf  ;;  %v1774_v17 = vsel %vm1712_vm4, %v1701_v25, -inf }
 0x2eb   :  { %v1731_v49 = vsel %vm1712_vm4, %v1682_v54, -inf  ;;  %v1775_v6 = vmax.f32 %v1771_v55, %v1774_v17 }
 0x2ec   :  { %v1732_v60 = vmax.f32 %v3678_v13, %v1731_v49 }
 0x2f0   :  { %v1561_v42 = vpop.f32.mrf.mxu2 }
 0x2f1   :  { %v1504_v26 = vpop.f32.mrf.mxu1  ;;  %v1702_v45 = vsel %vm1622_vm1, %v1561_v42, -inf }
 0x2f2   :  { %v1683_v1 = vsel %vm1623_vm13, %v1504_v26, -inf  ;;  %v1776_v48 = vsel %vm1712_vm4, %v1702_v45, -inf }
 0x2f3   :  { %v1733_v28 = vsel %vm1712_vm4, %v1683_v1, -inf  ;;  %v1777_v22 = vmax.f32 %v1773_v3, %v1776_v48 }
 0x2f4   :  { %v1734_v41 = vmax.f32 %v3686_v50, %v1733_v28 }
 0x2f8   :  { %v1564_v27 = vpop.f32.mrf.mxu2 }
 0x2f9   :  { %v1507_v4 = vpop.f32.mrf.mxu1  ;;  %v1703_v36 = vsel %vm1623_vm13, %v1564_v27, -inf }
 0x2fa   :  { %v1684_v40 = vsel %vm1624_vm14, %v1507_v4, -inf  ;;  %v1778_v29 = vsel %vm1712_vm4, %v1703_v36, -inf }
 0x2fb   :  { %v1735_v38 = vsel %vm1712_vm4, %v1684_v40, -inf  ;;  %v1779_v47 = vmax.f32 %v1775_v6, %v1778_v29 }
 0x2fc   :  { %v1736_v12 = vmax.f32 %v1732_v60, %v1735_v38 }
 0x300   :  { %v1567_v37 = vpop.f32.mrf.mxu2 }
 0x301   :  { %v1510_v18 = vpop.f32.mrf.mxu1  ;;  %v1704_v10 = vsel %vm1624_vm14, %v1567_v37, -inf }
 0x302   :  { %v1780_v52 = vsel %vm1712_vm4, %v1704_v10, -inf  ;;  %v1685_v59 = vsel %vm1625_vm15, %v1510_v18, -inf }
 0x303   :  { %v1781_v55 = vmax.f32 %v1777_v22, %v1780_v52  ;;  %v1737_v51 = vsel %vm1712_vm4, %v1685_v59, -inf }
 0x304   :  { %v1738_v42 = vmax.f32 %v1734_v41, %v1737_v51 }
 0x308   :  { %v1570_v44 = vpop.f32.mrf.mxu2 }
 0x309   :  { %v1513_v35 = vpop.f32.mrf.mxu1  ;;  %v1705_v43 = vsel %vm1625_vm15, %v1570_v44, -inf }
 0x30a   :  { %v1782_v20 = vsel %vm1712_vm4, %v1705_v43, -inf  ;;  %v1686_v16 = vsel %vm1626_vm0, %v1513_v35, -inf  ;;  %v1846_v35 = vld [vmem:[%s3788_s7] sm:$0xff] }
 0x30b   :  { %v1783_v46 = vmax.f32 %v1779_v47, %v1782_v20  ;;  %v1739_v54 = vsel %vm1712_vm4, %v1686_v16, -inf  ;;  %1870 = vmatpush.msra.mxu3 %v1846_v35  ;;  %v2347_v20 = vld [vmem:[%s3787_s6] ss:$0 sm:$0xff]  ;;  %s1916_s6 = sshll.u32 %s2385_s24, 4  ;;  %s1917_s6 = int_to_ptr.vmem [resolvable:$true] %s1916_s6 }
 0x310   :  { %v1573_v7 = vpop.f32.mrf.mxu2 }
 0x311   :  { %v1516_v30 = vpop.f32.mrf.mxu1  ;;  %v1706_v19 = vsel %vm1626_vm0, %v1573_v7, -inf  ;;  %v1740_v7 = vmax.f32 %v1736_v12, %v1739_v54 }
 0x312   :  { %v1687_v62 = vsel %vm1627_vm2, %v1516_v30, -inf  ;;  %v1784_v3 = vsel %vm1712_vm4, %v1706_v19, -inf }
 0x313   :  { %v1741_v49 = vsel %vm1712_vm4, %v1687_v62, -inf  ;;  %v1785_v53 = vmax.f32 %v1781_v55, %v1784_v3 }
 0x314   :  { %v1742_v30 = vmax.f32 %v1738_v42, %v1741_v49 }
 0x318   :  { %v1576_v21 = vpop.f32.mrf.mxu2 }
 0x319   :  { %v1519_v2 = vpop.f32.mrf.mxu1  ;;  %v1707_v14 = vsel %vm1627_vm2, %v1576_v21, -inf }
 0x31a   :  { %v1786_v5 = vsel %vm1712_vm4, %v1707_v14, -inf  ;;  %v1688_v8 = vsel %vm1628_vm3, %v1519_v2, -inf }
 0x31b   :  { %v1787_v37 = vmax.f32 %v1783_v46, %v1786_v5  ;;  %v1743_v18 = vsel %vm1712_vm4, %v1688_v8, -inf  ;;  %v2349_v8 = vld [vmem:[%s3791_s10] ss:$0 sm:$0xff] }
 0x320   :  { %v1579_v15 = vpop.f32.mrf.mxu2 }
 0x321   :  { %v1522_v63 = vpop.f32.mrf.mxu1  ;;  %v1708_v58 = vsel %vm1628_vm3, %v1579_v15, -inf  ;;  %v1744_v15 = vmax.f32 %v1740_v7, %v1743_v18 }
 0x322   :  { %v1689_v50 = vsel %vm1629_vm5, %v1522_v63, -inf  ;;  %v1788_v26 = vsel %vm1712_vm4, %v1708_v58, -inf  ;;  %v2348_v58 = vld [vmem:[%s3789_s8] ss:$0 sm:$0xff] }
 0x323   :  { %v1745_v44 = vsel %vm1712_vm4, %v1689_v50, -inf  ;;  %v1789_v24 = vmax.f32 %v1785_v53, %v1788_v26 }
 0x324   :  { %v1746_v1 = vmax.f32 %v1742_v30, %v1745_v44 }
 0x328   :  { %v1582_v33 = vpop.f32.mrf.mxu2 }
 0x329   :  { %v1525_v13 = vpop.f32.mrf.mxu1  ;;  %v1709_v56 = vsel %vm1629_vm5, %v1582_v33, -inf }
 0x32a   :  { %v1790_v27 = vsel %vm1712_vm4, %v1709_v56, -inf  ;;  %v1690_v4 = vsel %vm1630_vm7, %v1525_v13, -inf  ;;  %v1876_v13 = vld [vmem:[%s3790_s9] sm:$0xf] }
 0x32b   :  { %v1791_v34 = vmax.f32 %v1787_v37, %v1790_v27  ;;  %v1747_v25 = vsel %vm1712_vm4, %v1690_v4, -inf  ;;  %2010 = vmatpush.msk.msrb.mxu3 %vm1885_vm9, %v1876_v13 }
 0x32c   :  { %v1588_v9 = vpop.f32.mrf.mxu3  ;;  %v1748_v48 = vmax.f32 %v1744_v15, %v1747_v25 }
 0x32d   :  { %v1711_v60 = vsel %vm1631_vm6, %v1588_v9, -inf }
 0x32e   :  { %v1794_v21 = vsel %vm1712_vm4, %v1711_v60, -inf }
 0x32f   :  { %v1795_v36 = vmax.f32 %v1791_v34, %v1794_v21 }
 0x330   :  { %v1585_v2 = vpop.f32.mrf.mxu2 }
 0x331   :  { %v1710_v45 = vsel %vm1630_vm7, %v1585_v2, -inf  ;;  %v1528_v0 = vpop.f32.mrf.mxu1 }
 0x332   :  { %v1792_v63 = vsel %vm1712_vm4, %v1710_v45, -inf  ;;  %v1691_v17 = vsel %vm1631_vm6, %v1528_v0, -inf }
 0x333   :  { %v1793_v40 = vmax.f32 %v1789_v24, %v1792_v63  ;;  %v1749_v57 = vsel %vm1712_vm4, %v1691_v17, -inf }
 0x334   :  { %v1750_v10 = vmax.f32 %v1746_v1, %v1749_v57 }
 0x335   :  { %v1796_v32 = vmax.f32 %v1793_v40, %v1795_v36 }
 0x336   :  { %v1751_v28 = vmax.f32 %v1748_v48, %v1750_v10 }
 0x337   :  { %v1797_v23 = vrot.slane %v1796_v32, 4 }
 0x338   :  { %v1752_v6 = vrot.slane %v1751_v28, 4 }
 0x339   :  { %v1798_v29 = vmax.f32 %v1796_v32, %v1797_v23 }
 0x33a   :  { %v1753_v38 = vmax.f32 %v1751_v28, %v1752_v6 }
 0x33b   :  { %v1799_v61 = vrot.slane %v1798_v29, 2 }
 0x33c   :  { %v1754_v22 = vrot.slane %v1753_v38, 2 }
 0x33d   :  { %v1800_v52 = vmax.f32 %v1798_v29, %v1799_v61 }
 0x33e   :  { %v1755_v41 = vmax.f32 %v1753_v38, %v1754_v22 }
 0x33f   :  { %v1801_v43 = vrot.slane %v1800_v52, 1 }
 0x340   :  { %v1756_v39 = vrot.slane %v1755_v41, 1 }
 0x341   :  { %v1802_v11 = vmax.f32 %v1800_v52, %v1801_v43 }
 0x342   :  { %v1757_v47 = vmax.f32 %v1755_v41, %v1756_v39 }
 0x343   :  { %v1808_v12 = vadd.f32 %v2346_v31, %v1802_v11 }
 0x344   :  { %v1807_v59 = vadd.f32 %v2346_v31, %v1757_v47 }
 0x345   :  { %2350 = vtanh.f32 %v1808_v12 }
 0x346   :  { %2352 = vtanh.f32 %v1807_v59 }
 0x34b   :  { %v2351_v33 = vpop.eup %2350 }
 0x34c   :  { %v2353_v55 = vpop.eup %2352  ;;  %v1820_v19 = vrot.slane %v2351_v33, 7 }
 0x34e   :  { %v1822_v14 = vsel %vm1821_vm8, %v1820_v19, %v2353_v55 }
 0x34f   :  { %2008 = vmatmul.msk.f32.vlgmr.msrb.gmra.mxu2 %vm1712_vm4, %v1822_v14  ;;  %vm1881_vm4 = vcmask 31744  }
 0x3d2   :  { %v1842_v16 = vpop.f32.mrf.mxu2 }
 0x3d3   :  { %v1843_v62 = vadd.f32 %v2347_v20, %v1842_v16 }
 0x3d5   :  { %v1845_v51 = vmax.f32 %v1843_v62, 0.0 }
 0x3d7   :  { %2009 = vmatmul.msk.f32.vlgmr.msra.gmra.mxu3 %vm1851_vm10, %v1845_v51 }
 0x45a   :  { %v1872_v56 = vpop.f32.mrf.mxu3 }
 0x45b   :  { %v1873_v3 = vadd.f32 %v2348_v58, %v1872_v56 }
 0x45d   :  { %v1875_v5 = vmax.f32 %v1873_v3, 0.0 }
 0x45f   :  { %2011 = vmatmul.msk.f32.vlgmr.msrb.gmra.mxu3 %vm1881_vm4, %v1875_v5 }
 0x4e2   :  { %v1906_v50 = vpop.f32.mrf.mxu3 }
 0x4e3   :  { %v1907_v9 = vadd.f32 %v2349_v8, %v1906_v50 }
 0x4e5   :  { %1910 = vst.msk [vmem:[#allocation2] sm:$0x3] %vm1909_vm11, %v1907_v9 }
 0x4e6   :  { %1921 = dma.vmem_to_hbm [thread:$0]  %s1917_s6, 32, %s1919_s27, [#allocation3]  }
 0x4e7   :  { %2378 = dma.done.wait [#allocation3], 32  }
 0x4e8   :  { %2379 = vsyncadd [#allocation3], 4294967264 }
 0x4e9   :  { %1926 = vsyncpa [#allocation3], 1 }

</bundles_post_ra>
